<compile_context>
chip_gen: v6e
topology: v6e:2x2x1
jax: 0.10.0
libtpu: 0.0.40
codegen_flags: <defaults>
</compile_context>

<pallas_src>
import functools

import jax
import jax.numpy as jnp
from jax.experimental import pallas as pl
from jax.experimental.pallas import tpu as pltpu


# ----------------------------------------------------------------------------
# In-kernel helpers
# ----------------------------------------------------------------------------
def _fast_recip(x):
    """EUP approximate reciprocal + one Newton step (~fp32-accurate, off the VPU)."""
    r = pl.reciprocal(x, approx=True)
    return r * (2.0 - x * r)


def _layernorm(z, a, b, eps):
    """PyTorch LayerNormalization: unbiased std (ddof=1), eps added to sigma."""
    d = z.shape[-1]
    mu = jnp.mean(z, axis=-1, keepdims=True)
    var = jnp.sum((z - mu) ** 2, axis=-1, keepdims=True) * (1.0 / (d - 1))
    sigma = jnp.sqrt(var)
    return (z - mu) * _fast_recip(sigma + eps) * a + b


# ----------------------------------------------------------------------------
# Fused StreamAttentionBlock kernel (single grid step over the whole batch)
# ----------------------------------------------------------------------------
def stream_block_kernel(x_ref, ctx_ref, swqkv_ref, cwq_ref, cwkv_ref,
                        w1_ref, w2_ref, vec_ref, o_ref,
                        *, batch, t_q, t_c, n_head, d_k, d_v, d_model, d_inner,
                        temper, eps, apply_ln):
    f32, bf16 = jnp.float32, jnp.bfloat16
    inv_temper = 1.0 / temper
    D, Di = d_model, d_inner
    Hdk, Hdv = n_head * d_k, n_head * d_v

    x = x_ref[...]          # (B*T,  D) fp32
    ctx = ctx_ref[...]      # (B*Tc, D) fp32

    # Packed LayerNorm / bias vectors (one DMA instead of eight).
    vecs = vec_ref[...]                         # (8, max(D, Di))
    self_a, self_b = vecs[0:1, :D], vecs[1:2, :D]
    cross_a, cross_b = vecs[2:3, :D], vecs[3:4, :D]
    ffn_a, ffn_b = vecs[4:5, :D], vecs[5:6, :D]
    b2 = vecs[6:7, :D]
    b1 = vecs[7:8, :Di]

    # Per-head lane masks over the fused projection outputs (d_k == d_v).
    lane = jax.lax.broadcasted_iota(jnp.int32, (1, Hdk), 1)
    head_masks = [(lane >= h * d_k) & (lane < (h + 1) * d_k) for h in range(n_head)]

    def attention(qh_all, kh_all, vh_all, len_q, len_k):
        """Multi-head attention on already-projected heads.

        qh_all: (B*len_q, H*dk), kh_all/vh_all: (B*len_k, H*dk / H*dv).
        Per batch element: ONE stacked score matmul, ONE softmax pass,
        ONE PV matmul, masked sublane-slice accumulation back to (len_q, H*dv).
        """
        outs = []
        for b in range(batch):                              # static unroll, B small
            qh = qh_all[b * len_q:(b + 1) * len_q]          # (Tq, H*dk) fp32
            kh = kh_all[b * len_k:(b + 1) * len_k].astype(bf16)   # (Tk, H*dk)
            vh = vh_all[b * len_k:(b + 1) * len_k].astype(bf16)   # (Tk, H*dv)

            # Stack the H masked-Q copies along sublanes -> block-diagonal contraction
            # against full-width K gives every head's Q_h @ K_h^T in one push.
            q_stack = jnp.concatenate(
                [jnp.where(head_masks[h], qh, 0.0) for h in range(n_head)],
                axis=0).astype(bf16)                        # (H*Tq, H*dk), zeros exact
            s = jax.lax.dot_general(
                q_stack, kh, (((1,), (1,)), ((), ())),
                preferred_element_type=f32) * inv_temper    # (H*Tq, Tk)
            s = s - jnp.max(s, axis=-1, keepdims=True)
            e = jnp.exp(s)
            p = e * _fast_recip(jnp.sum(e, axis=-1, keepdims=True))

            # One PV matmul for all heads; per-head (T, H*dv) slabs are selected by
            # lane mask and accumulated into the lane-contiguous output.
            full = jnp.dot(p.astype(bf16), vh,
                           preferred_element_type=f32)      # (H*Tq, H*dv)
            out = jnp.zeros((len_q, Hdv), f32)
            for h in range(n_head):
                out = out + jnp.where(head_masks[h],
                                      full[h * len_q:(h + 1) * len_q, :], 0.0)
            outs.append(out)
        return jnp.concatenate(outs, axis=0) if batch > 1 else outs[0]

    # --- DecoderBlock.slf_attn : MHA(x, x, x) -------------------------------
    qkv = jnp.dot(x.astype(bf16), swqkv_ref[...].astype(bf16),
                  preferred_element_type=f32)               # (B*T, 3*H*dk)
    qh, kh, vh = qkv[:, :Hdk], qkv[:, Hdk:2 * Hdk], qkv[:, 2 * Hdk:3 * Hdk]
    y = attention(qh, kh, vh, t_q, t_q) + x                 # residual (H*dv == D)
    if apply_ln:
        y = _layernorm(y, self_a, self_b, eps)

    # --- CrossAttentionBlock.cross_attn : MHA(q=y, k=ctx, v=ctx) ------------
    q2 = jnp.dot(y.astype(bf16), cwq_ref[...].astype(bf16),
                 preferred_element_type=f32)                # (B*T, H*dk)
    kv = jnp.dot(ctx.astype(bf16), cwkv_ref[...].astype(bf16),
                 preferred_element_type=f32)                # (B*Tc, 2*H*dk)
    kh2, vh2 = kv[:, :Hdk], kv[:, Hdk:2 * Hdk]
    y2 = attention(q2, kh2, vh2, t_q, t_c) + y
    if apply_ln:
        y2 = _layernorm(y2, cross_a, cross_b, eps)

    # --- CrossAttentionBlock.feed_forward : Conv1d(k=1) == dense matmuls ----
    h = jnp.dot(y2.astype(bf16), w1_ref[...].astype(bf16),
                preferred_element_type=f32) + b1
    h = jnp.maximum(h, 0.0)                                 # ReLU
    f = jnp.dot(h.astype(bf16), w2_ref[...].astype(bf16),
                preferred_element_type=f32) + b2
    z = f + y2
    if apply_ln:
        z = _layernorm(z, ffn_a, ffn_b, eps)
    o_ref[...] = z


# ----------------------------------------------------------------------------
# Wrapper (single pallas_call, single grid step)
# ----------------------------------------------------------------------------
def stream_attention_block(x, context, params, *, input_size):
    B, T, D = x.shape
    _, Tc, _ = context.shape
    H, _, d_k = params["self_wq"].shape
    d_v = params["self_wv"].shape[-1]
    assert d_k == d_v and H * d_v == D, "module requires n_heads*d_v == input_size"
    Di = params["ffn_w1"].shape[0]
    W = max(D, Di)

    temper = float(input_size) ** 0.5   # ScaledDotProductAttention(d_model=input_size)
    eps = 1e-3
    apply_ln = T != 1                   # mirrors LayerNormalization's `if z.shape[1]==1`

    def comb(w):                        # (H, D, dh) -> (D, H*dh): fused head projection
        Hh, Din, dh = w.shape
        return jnp.transpose(w, (1, 0, 2)).reshape(Din, Hh * dh)

    # Fused projection weights: self QKV -> one matrix, cross K|V -> one matrix.
    swqkv = jnp.concatenate(
        [comb(params["self_wq"]), comb(params["self_wk"]), comb(params["self_wv"])],
        axis=1)                                              # (D, 3*H*dk)
    cwq = comb(params["cross_wq"])                           # (D, H*dk)
    cwkv = jnp.concatenate(
        [comb(params["cross_wk"]), comb(params["cross_wv"])], axis=1)  # (D, 2*H*dk)
    w1t = params["ffn_w1"].T                                 # (D, Di)
    w2t = params["ffn_w2"].T                                 # (Di, D)

    # Pack the eight LayerNorm / bias vectors into one (8, W) array.
    def row(v):
        v = jnp.asarray(v, jnp.float32).reshape(1, -1)
        return jnp.pad(v, ((0, 0), (0, W - v.shape[1])))

    vecs = jnp.concatenate(
        [row(params["self_ln_a"]), row(params["self_ln_b"]),
         row(params["cross_ln_a"]), row(params["cross_ln_b"]),
         row(params["ffn_ln_a"]), row(params["ffn_ln_b"]),
         row(params["ffn_b2"]), row(params["ffn_b1"])], axis=0)   # (8, W)

    xf = x.reshape(B * T, D)
    cf = context.reshape(B * Tc, D)

    kernel = functools.partial(
        stream_block_kernel, batch=B, t_q=T, t_c=Tc, n_head=H, d_k=d_k, d_v=d_v,
        d_model=D, d_inner=Di, temper=temper, eps=eps, apply_ln=apply_ln)

    c0 = lambda i: (0, 0)
    out = pl.pallas_call(
        kernel,
        out_shape=jax.ShapeDtypeStruct((B * T, D), jnp.float32),
        grid=(1,),   # single step: whole batch fits trivially in VMEM at these shapes
        in_specs=[
            pl.BlockSpec((B * T, D), c0),
            pl.BlockSpec((B * Tc, D), c0),
            pl.BlockSpec((D, 3 * H * d_k), c0),
            pl.BlockSpec((D, H * d_k), c0),
            pl.BlockSpec((D, 2 * H * d_k), c0),
            pl.BlockSpec((D, Di), c0),
            pl.BlockSpec((Di, D), c0),
            pl.BlockSpec((8, W), c0),
        ],
        out_specs=pl.BlockSpec((B * T, D), c0),
        compiler_params=pltpu.CompilerParams(dimension_semantics=("arbitrary",)),
    )(xf, cf, swqkv, cwq, cwkv, w1t, w2t, vecs)
    return out.reshape(B, T, D)


# ----------------------------------------------------------------------------
# Pure-JAX fp32 reference (for verification)
# ----------------------------------------------------------------------------
def _ln_ref(z, a, b, eps=1e-3):
    if z.shape[1] == 1:
        return z
    mu = z.mean(-1, keepdims=True)
    sigma = jnp.sqrt(((z - mu) ** 2).sum(-1, keepdims=True) / (z.shape[-1] - 1))
    return (z - mu) / (sigma + eps) * a + b


def _mha_ref(q, k, v, wq, wk, wv, a, b, temper):
    qh = jnp.einsum("btd,hdk->bhtk", q, wq)
    kh = jnp.einsum("btd,hdk->bhtk", k, wk)
    vh = jnp.einsum("btd,hdk->bhtk", v, wv)
    attn = jax.nn.softmax(jnp.einsum("bhtk,bhsk->bhts", qh, kh) / temper, -1)
    out = jnp.einsum("bhts,bhsv->bhtv", attn, vh)
    B, H, T, dv = out.shape
    out = out.transpose(0, 2, 1, 3).reshape(B, T, H * dv)
    return _ln_ref(out + q, a, b)


def _ffn_ref(x, w1, b1, w2, b2, a, bb):
    h = jnp.maximum(jnp.einsum("btd,id->bti", x, w1) + b1, 0.0)
    out = jnp.einsum("bti,di->btd", h, w2) + b2
    return _ln_ref(out + x, a, bb)


def _block_ref(x, context, p, input_size):
    temper = float(input_size) ** 0.5
    x = _mha_ref(x, x, x, p["self_wq"], p["self_wk"], p["self_wv"],
                 p["self_ln_a"], p["self_ln_b"], temper)
    x = _mha_ref(x, context, context, p["cross_wq"], p["cross_wk"], p["cross_wv"],
                 p["cross_ln_a"], p["cross_ln_b"], temper)
    x = _ffn_ref(x, p["ffn_w1"], p["ffn_b1"], p["ffn_w2"], p["ffn_b2"],
                 p["ffn_ln_a"], p["ffn_ln_b"])
    return x


# ----------------------------------------------------------------------------
# Main
# ----------------------------------------------------------------------------
if __name__ == "__main__":
    # Module-consistent small shapes (residual in MHA requires
    # input_size == n_heads * d_v == hidden_size, as in the original module).
    B, T, Tc = 2, 8, 8
    input_size = 32
    hidden_size = 32
    inner_hidden = 64
    n_heads = 4
    d_k = d_v = hidden_size // n_heads

    key = jax.random.PRNGKey(0)
    keys = jax.random.split(key, 16)

    def xavier(k, shape, fan_in, fan_out):
        std = (2.0 / (fan_in + fan_out)) ** 0.5
        return std * jax.random.normal(k, shape, dtype=jnp.float32)

    params = {
        # self-attention MHA
        "self_wq": xavier(keys[0], (n_heads, input_size, d_k), input_size, d_k),
        "self_wk": xavier(keys[1], (n_heads, input_size, d_k), input_size, d_k),
        "self_wv": xavier(keys[2], (n_heads, input_size, d_v), input_size, d_v),
        "self_ln_a": jnp.ones((1, input_size), jnp.float32),
        "self_ln_b": jnp.zeros((1, input_size), jnp.float32),
        # cross-attention MHA
        "cross_wq": xavier(keys[3], (n_heads, input_size, d_k), input_size, d_k),
        "cross_wk": xavier(keys[4], (n_heads, input_size, d_k), input_size, d_k),
        "cross_wv": xavier(keys[5], (n_heads, input_size, d_v), input_size, d_v),
        "cross_ln_a": jnp.ones((1, input_size), jnp.float32),
        "cross_ln_b": jnp.zeros((1, input_size), jnp.float32),
        # position-wise FFN (Conv1d k=1 == dense); weights stored (out, in)
        "ffn_w1": 0.1 * jax.random.normal(keys[6], (inner_hidden, hidden_size), jnp.float32),
        "ffn_b1": 0.1 * jax.random.normal(keys[7], (inner_hidden,), jnp.float32),
        "ffn_w2": 0.1 * jax.random.normal(keys[8], (hidden_size, inner_hidden), jnp.float32),
        "ffn_b2": 0.1 * jax.random.normal(keys[9], (hidden_size,), jnp.float32),
        "ffn_ln_a": jnp.ones((1, hidden_size), jnp.float32),
        "ffn_ln_b": jnp.zeros((1, hidden_size), jnp.float32),
    }

    x = jax.random.normal(keys[10], (B, T, input_size), jnp.float32)
    context = jax.random.normal(keys[11], (B, Tc, input_size), jnp.float32)

    out = stream_attention_block(x, context, params, input_size=input_size)
    out = jax.block_until_ready(out)

    ref = _block_ref(x, context, params, input_size)
    assert out.shape == (B, T, hidden_size)
    # MXU operands are cast to bf16 (per perf review); accumulation and all
    # softmax/LayerNorm math stay fp32, so ~1e-2 agreement with the fp32
    # reference is expected across the three fused stages.
    assert jnp.allclose(out, ref, rtol=2e-2, atol=2e-2), "mismatch vs pure-JAX reference"

    # TODO(synk): nn.Dropout layers are treated as eval-mode identity (no RNG dropout).
    print("KERNEL_OK")
</pallas_src>

<mosaic_0001>
module attributes {stable_mosaic.version = 11 : i64} {
  func.func @stream_block_kernel(%arg0: i32, %arg1: memref<16x32xf32, #tpu.memory_space<vmem>>, %arg2: memref<16x32xf32, #tpu.memory_space<vmem>>, %arg3: memref<32x96xf32, #tpu.memory_space<vmem>>, %arg4: memref<32x32xf32, #tpu.memory_space<vmem>>, %arg5: memref<32x64xf32, #tpu.memory_space<vmem>>, %arg6: memref<32x64xf32, #tpu.memory_space<vmem>>, %arg7: memref<64x32xf32, #tpu.memory_space<vmem>>, %arg8: memref<8x64xf32, #tpu.memory_space<vmem>>, %arg9: memref<16x32xf32, #tpu.memory_space<vmem>>) attributes {dimension_semantics = [#tpu.dimension_semantics<arbitrary>], iteration_bounds = array<i64: 1>, scalar_prefetch = 0 : i64, scratch_operands = 0 : i64, tpu.core_type = #tpu.core_type<tc>, window_params = [{pipeline_mode = #tpu.pipeline_mode<synchronous>, transform_indices = @transform_0, window_bounds = array<i64: 16, 32>}, {pipeline_mode = #tpu.pipeline_mode<synchronous>, transform_indices = @transform_1, window_bounds = array<i64: 16, 32>}, {pipeline_mode = #tpu.pipeline_mode<synchronous>, transform_indices = @transform_2, window_bounds = array<i64: 32, 96>}, {pipeline_mode = #tpu.pipeline_mode<synchronous>, transform_indices = @transform_3, window_bounds = array<i64: 32, 32>}, {pipeline_mode = #tpu.pipeline_mode<synchronous>, transform_indices = @transform_4, window_bounds = array<i64: 32, 64>}, {pipeline_mode = #tpu.pipeline_mode<synchronous>, transform_indices = @transform_5, window_bounds = array<i64: 32, 64>}, {pipeline_mode = #tpu.pipeline_mode<synchronous>, transform_indices = @transform_6, window_bounds = array<i64: 64, 32>}, {pipeline_mode = #tpu.pipeline_mode<synchronous>, transform_indices = @transform_7, window_bounds = array<i64: 8, 64>}, {pipeline_mode = #tpu.pipeline_mode<synchronous>, transform_indices = @transform_8, window_bounds = array<i64: 16, 32>}]} {
    %c0 = arith.constant 0 : index
    %c0_0 = arith.constant 0 : index
    %0 = vector.load %arg1[%c0, %c0_0] : memref<16x32xf32, #tpu.memory_space<vmem>>, vector<16x32xf32>
    %c0_1 = arith.constant 0 : index
    %c0_2 = arith.constant 0 : index
    %1 = vector.load %arg2[%c0_1, %c0_2] : memref<16x32xf32, #tpu.memory_space<vmem>>, vector<16x32xf32>
    %c0_3 = arith.constant 0 : index
    %c0_4 = arith.constant 0 : index
    %2 = vector.load %arg8[%c0_3, %c0_4] : memref<8x64xf32, #tpu.memory_space<vmem>>, vector<8x64xf32>
    %3 = vector.extract_strided_slice %2 {offsets = [0, 0], sizes = [1, 32], strides = [1, 1]} : vector<8x64xf32> to vector<1x32xf32>
    %4 = vector.extract_strided_slice %2 {offsets = [1, 0], sizes = [1, 32], strides = [1, 1]} : vector<8x64xf32> to vector<1x32xf32>
    %5 = vector.extract_strided_slice %2 {offsets = [2, 0], sizes = [1, 32], strides = [1, 1]} : vector<8x64xf32> to vector<1x32xf32>
    %6 = vector.extract_strided_slice %2 {offsets = [3, 0], sizes = [1, 32], strides = [1, 1]} : vector<8x64xf32> to vector<1x32xf32>
    %7 = vector.extract_strided_slice %2 {offsets = [4, 0], sizes = [1, 32], strides = [1, 1]} : vector<8x64xf32> to vector<1x32xf32>
    %8 = vector.extract_strided_slice %2 {offsets = [5, 0], sizes = [1, 32], strides = [1, 1]} : vector<8x64xf32> to vector<1x32xf32>
    %9 = vector.extract_strided_slice %2 {offsets = [6, 0], sizes = [1, 32], strides = [1, 1]} : vector<8x64xf32> to vector<1x32xf32>
    %10 = vector.extract_strided_slice %2 {offsets = [7, 0], sizes = [1, 64], strides = [1, 1]} : vector<8x64xf32> to vector<1x64xf32>
    %11 = tpu.iota {dimensions = array<i32: 1>} : vector<1x32xi32>
    %c0_i32 = arith.constant 0 : i32
    %12 = vector.broadcast %c0_i32 : i32 to vector<1x32xi32>
    %13 = arith.cmpi sge, %11, %12 : vector<1x32xi32>
    %c8_i32 = arith.constant 8 : i32
    %14 = vector.broadcast %c8_i32 : i32 to vector<1x32xi32>
    %15 = arith.cmpi slt, %11, %14 : vector<1x32xi32>
    %16 = arith.andi %13, %15 : vector<1x32xi1>
    %c8_i32_5 = arith.constant 8 : i32
    %17 = vector.broadcast %c8_i32_5 : i32 to vector<1x32xi32>
    %18 = arith.cmpi sge, %11, %17 : vector<1x32xi32>
    %c16_i32 = arith.constant 16 : i32
    %19 = vector.broadcast %c16_i32 : i32 to vector<1x32xi32>
    %20 = arith.cmpi slt, %11, %19 : vector<1x32xi32>
    %21 = arith.andi %18, %20 : vector<1x32xi1>
    %c16_i32_6 = arith.constant 16 : i32
    %22 = vector.broadcast %c16_i32_6 : i32 to vector<1x32xi32>
    %23 = arith.cmpi sge, %11, %22 : vector<1x32xi32>
    %c24_i32 = arith.constant 24 : i32
    %24 = vector.broadcast %c24_i32 : i32 to vector<1x32xi32>
    %25 = arith.cmpi slt, %11, %24 : vector<1x32xi32>
    %26 = arith.andi %23, %25 : vector<1x32xi1>
    %c24_i32_7 = arith.constant 24 : i32
    %27 = vector.broadcast %c24_i32_7 : i32 to vector<1x32xi32>
    %28 = arith.cmpi sge, %11, %27 : vector<1x32xi32>
    %c32_i32 = arith.constant 32 : i32
    %29 = vector.broadcast %c32_i32 : i32 to vector<1x32xi32>
    %30 = arith.cmpi slt, %11, %29 : vector<1x32xi32>
    %31 = arith.andi %28, %30 : vector<1x32xi1>
    %32 = arith.truncf %0 : vector<16x32xf32> to vector<16x32xbf16>
    %c0_8 = arith.constant 0 : index
    %c0_9 = arith.constant 0 : index
    %33 = vector.load %arg3[%c0_8, %c0_9] : memref<32x96xf32, #tpu.memory_space<vmem>>, vector<32x96xf32>
    %34 = arith.truncf %33 : vector<32x96xf32> to vector<32x96xbf16>
    %cst = arith.constant dense<0.000000e+00> : vector<16x96xf32>
    %35 = tpu.matmul %32, %34, %cst {dimension_numbers = #tpu.dot_dimension_numbers<[1], [0], [0], [1], [0, 0, 1, 1], [], []>} : vector<16x32xbf16>, vector<32x96xbf16>, vector<16x96xf32> -> vector<16x96xf32>
    %36 = vector.extract_strided_slice %35 {offsets = [0, 0], sizes = [16, 32], strides = [1, 1]} : vector<16x96xf32> to vector<16x32xf32>
    %37 = vector.extract_strided_slice %35 {offsets = [0, 32], sizes = [16, 32], strides = [1, 1]} : vector<16x96xf32> to vector<16x32xf32>
    %38 = vector.extract_strided_slice %35 {offsets = [0, 64], sizes = [16, 32], strides = [1, 1]} : vector<16x96xf32> to vector<16x32xf32>
    %39 = vector.extract_strided_slice %36 {offsets = [0, 0], sizes = [8, 32], strides = [1, 1]} : vector<16x32xf32> to vector<8x32xf32>
    %40 = vector.extract_strided_slice %37 {offsets = [0, 0], sizes = [8, 32], strides = [1, 1]} : vector<16x32xf32> to vector<8x32xf32>
    %41 = arith.truncf %40 : vector<8x32xf32> to vector<8x32xbf16>
    %42 = vector.extract_strided_slice %38 {offsets = [0, 0], sizes = [8, 32], strides = [1, 1]} : vector<16x32xf32> to vector<8x32xf32>
    %43 = arith.truncf %42 : vector<8x32xf32> to vector<8x32xbf16>
    %cst_10 = arith.constant 0.000000e+00 : f32
    %44 = vector.shape_cast %16 : vector<1x32xi1> to vector<1x32xi1>
    %45 = vector.broadcast %44 : vector<1x32xi1> to vector<8x32xi1>
    %46 = vector.broadcast %cst_10 : f32 to vector<8x32xf32>
    %47 = arith.select %45, %39, %46 : vector<8x32xi1>, vector<8x32xf32>
    %cst_11 = arith.constant 0.000000e+00 : f32
    %48 = vector.shape_cast %21 : vector<1x32xi1> to vector<1x32xi1>
    %49 = vector.broadcast %48 : vector<1x32xi1> to vector<8x32xi1>
    %50 = vector.broadcast %cst_11 : f32 to vector<8x32xf32>
    %51 = arith.select %49, %39, %50 : vector<8x32xi1>, vector<8x32xf32>
    %cst_12 = arith.constant 0.000000e+00 : f32
    %52 = vector.shape_cast %26 : vector<1x32xi1> to vector<1x32xi1>
    %53 = vector.broadcast %52 : vector<1x32xi1> to vector<8x32xi1>
    %54 = vector.broadcast %cst_12 : f32 to vector<8x32xf32>
    %55 = arith.select %53, %39, %54 : vector<8x32xi1>, vector<8x32xf32>
    %cst_13 = arith.constant 0.000000e+00 : f32
    %56 = vector.shape_cast %31 : vector<1x32xi1> to vector<1x32xi1>
    %57 = vector.broadcast %56 : vector<1x32xi1> to vector<8x32xi1>
    %58 = vector.broadcast %cst_13 : f32 to vector<8x32xf32>
    %59 = arith.select %57, %39, %58 : vector<8x32xi1>, vector<8x32xf32>
    %60 = tpu.concatenate %47, %51, %55, %59 in 0 : vector<8x32xf32>, vector<8x32xf32>, vector<8x32xf32>, vector<8x32xf32> -> vector<32x32xf32>
    %61 = arith.truncf %60 : vector<32x32xf32> to vector<32x32xbf16>
    %cst_14 = arith.constant dense<0.000000e+00> : vector<32x8xf32>
    %62 = tpu.matmul %61, %41, %cst_14 {dimension_numbers = #tpu.dot_dimension_numbers<[1], [1], [0], [0], [0, 0, 1, 0], [], []>} : vector<32x32xbf16>, vector<8x32xbf16>, vector<32x8xf32> -> vector<32x8xf32>
    %cst_15 = arith.constant 0.176776692 : f32
    %63 = vector.broadcast %cst_15 : f32 to vector<32x8xf32>
    %64 = arith.mulf %62, %63 : vector<32x8xf32>
    %cst_16 = arith.constant dense<0xFF800000> : vector<32xf32>
    %65 = vector.multi_reduction <maximumf>, %64, %cst_16 [1] : vector<32x8xf32> to vector<32xf32>
    %66 = vector.shape_cast %65 : vector<32xf32> to vector<32x1xf32>
    %67 = vector.broadcast %66 : vector<32x1xf32> to vector<32x8xf32>
    %68 = arith.subf %64, %67 : vector<32x8xf32>
    %69 = math.exp %68 : vector<32x8xf32>
    %cst_17 = arith.constant dense<0.000000e+00> : vector<32xf32>
    %70 = vector.multi_reduction <add>, %69, %cst_17 [1] : vector<32x8xf32> to vector<32xf32>
    %71 = vector.shape_cast %70 : vector<32xf32> to vector<32x1xf32>
    %72 = tpu.reciprocal %71 {approx = true} : vector<32x1xf32> -> vector<32x1xf32>
    %73 = arith.mulf %71, %72 : vector<32x1xf32>
    %cst_18 = arith.constant 2.000000e+00 : f32
    %74 = vector.broadcast %cst_18 : f32 to vector<32x1xf32>
    %75 = arith.subf %74, %73 : vector<32x1xf32>
    %76 = arith.mulf %72, %75 : vector<32x1xf32>
    %77 = vector.broadcast %76 : vector<32x1xf32> to vector<32x8xf32>
    %78 = arith.mulf %69, %77 : vector<32x8xf32>
    %79 = arith.truncf %78 : vector<32x8xf32> to vector<32x8xbf16>
    %cst_19 = arith.constant dense<0.000000e+00> : vector<32x32xf32>
    %80 = tpu.matmul %79, %43, %cst_19 {dimension_numbers = #tpu.dot_dimension_numbers<[1], [0], [0], [1], [0, 0, 1, 1], [], []>} : vector<32x8xbf16>, vector<8x32xbf16>, vector<32x32xf32> -> vector<32x32xf32>
    %cst_20 = arith.constant 0.000000e+00 : f32
    %81 = vector.broadcast %cst_20 : f32 to vector<8x32xf32>
    %82 = vector.extract_strided_slice %80 {offsets = [0, 0], sizes = [8, 32], strides = [1, 1]} : vector<32x32xf32> to vector<8x32xf32>
    %cst_21 = arith.constant 0.000000e+00 : f32
    %83 = vector.shape_cast %16 : vector<1x32xi1> to vector<1x32xi1>
    %84 = vector.broadcast %83 : vector<1x32xi1> to vector<8x32xi1>
    %85 = vector.broadcast %cst_21 : f32 to vector<8x32xf32>
    %86 = arith.select %84, %82, %85 : vector<8x32xi1>, vector<8x32xf32>
    %87 = arith.addf %81, %86 : vector<8x32xf32>
    %88 = vector.extract_strided_slice %80 {offsets = [8, 0], sizes = [8, 32], strides = [1, 1]} : vector<32x32xf32> to vector<8x32xf32>
    %cst_22 = arith.constant 0.000000e+00 : f32
    %89 = vector.shape_cast %21 : vector<1x32xi1> to vector<1x32xi1>
    %90 = vector.broadcast %89 : vector<1x32xi1> to vector<8x32xi1>
    %91 = vector.broadcast %cst_22 : f32 to vector<8x32xf32>
    %92 = arith.select %90, %88, %91 : vector<8x32xi1>, vector<8x32xf32>
    %93 = arith.addf %87, %92 : vector<8x32xf32>
    %94 = vector.extract_strided_slice %80 {offsets = [16, 0], sizes = [8, 32], strides = [1, 1]} : vector<32x32xf32> to vector<8x32xf32>
    %cst_23 = arith.constant 0.000000e+00 : f32
    %95 = vector.shape_cast %26 : vector<1x32xi1> to vector<1x32xi1>
    %96 = vector.broadcast %95 : vector<1x32xi1> to vector<8x32xi1>
    %97 = vector.broadcast %cst_23 : f32 to vector<8x32xf32>
    %98 = arith.select %96, %94, %97 : vector<8x32xi1>, vector<8x32xf32>
    %99 = arith.addf %93, %98 : vector<8x32xf32>
    %100 = vector.extract_strided_slice %80 {offsets = [24, 0], sizes = [8, 32], strides = [1, 1]} : vector<32x32xf32> to vector<8x32xf32>
    %cst_24 = arith.constant 0.000000e+00 : f32
    %101 = vector.shape_cast %31 : vector<1x32xi1> to vector<1x32xi1>
    %102 = vector.broadcast %101 : vector<1x32xi1> to vector<8x32xi1>
    %103 = vector.broadcast %cst_24 : f32 to vector<8x32xf32>
    %104 = arith.select %102, %100, %103 : vector<8x32xi1>, vector<8x32xf32>
    %105 = arith.addf %99, %104 : vector<8x32xf32>
    %106 = vector.extract_strided_slice %36 {offsets = [8, 0], sizes = [8, 32], strides = [1, 1]} : vector<16x32xf32> to vector<8x32xf32>
    %107 = vector.extract_strided_slice %37 {offsets = [8, 0], sizes = [8, 32], strides = [1, 1]} : vector<16x32xf32> to vector<8x32xf32>
    %108 = arith.truncf %107 : vector<8x32xf32> to vector<8x32xbf16>
    %109 = vector.extract_strided_slice %38 {offsets = [8, 0], sizes = [8, 32], strides = [1, 1]} : vector<16x32xf32> to vector<8x32xf32>
    %110 = arith.truncf %109 : vector<8x32xf32> to vector<8x32xbf16>
    %cst_25 = arith.constant 0.000000e+00 : f32
    %111 = vector.shape_cast %16 : vector<1x32xi1> to vector<1x32xi1>
    %112 = vector.broadcast %111 : vector<1x32xi1> to vector<8x32xi1>
    %113 = vector.broadcast %cst_25 : f32 to vector<8x32xf32>
    %114 = arith.select %112, %106, %113 : vector<8x32xi1>, vector<8x32xf32>
    %cst_26 = arith.constant 0.000000e+00 : f32
    %115 = vector.shape_cast %21 : vector<1x32xi1> to vector<1x32xi1>
    %116 = vector.broadcast %115 : vector<1x32xi1> to vector<8x32xi1>
    %117 = vector.broadcast %cst_26 : f32 to vector<8x32xf32>
    %118 = arith.select %116, %106, %117 : vector<8x32xi1>, vector<8x32xf32>
    %cst_27 = arith.constant 0.000000e+00 : f32
    %119 = vector.shape_cast %26 : vector<1x32xi1> to vector<1x32xi1>
    %120 = vector.broadcast %119 : vector<1x32xi1> to vector<8x32xi1>
    %121 = vector.broadcast %cst_27 : f32 to vector<8x32xf32>
    %122 = arith.select %120, %106, %121 : vector<8x32xi1>, vector<8x32xf32>
    %cst_28 = arith.constant 0.000000e+00 : f32
    %123 = vector.shape_cast %31 : vector<1x32xi1> to vector<1x32xi1>
    %124 = vector.broadcast %123 : vector<1x32xi1> to vector<8x32xi1>
    %125 = vector.broadcast %cst_28 : f32 to vector<8x32xf32>
    %126 = arith.select %124, %106, %125 : vector<8x32xi1>, vector<8x32xf32>
    %127 = tpu.concatenate %114, %118, %122, %126 in 0 : vector<8x32xf32>, vector<8x32xf32>, vector<8x32xf32>, vector<8x32xf32> -> vector<32x32xf32>
    %128 = arith.truncf %127 : vector<32x32xf32> to vector<32x32xbf16>
    %cst_29 = arith.constant dense<0.000000e+00> : vector<32x8xf32>
    %129 = tpu.matmul %128, %108, %cst_29 {dimension_numbers = #tpu.dot_dimension_numbers<[1], [1], [0], [0], [0, 0, 1, 0], [], []>} : vector<32x32xbf16>, vector<8x32xbf16>, vector<32x8xf32> -> vector<32x8xf32>
    %cst_30 = arith.constant 0.176776692 : f32
    %130 = vector.broadcast %cst_30 : f32 to vector<32x8xf32>
    %131 = arith.mulf %129, %130 : vector<32x8xf32>
    %cst_31 = arith.constant dense<0xFF800000> : vector<32xf32>
    %132 = vector.multi_reduction <maximumf>, %131, %cst_31 [1] : vector<32x8xf32> to vector<32xf32>
    %133 = vector.shape_cast %132 : vector<32xf32> to vector<32x1xf32>
    %134 = vector.broadcast %133 : vector<32x1xf32> to vector<32x8xf32>
    %135 = arith.subf %131, %134 : vector<32x8xf32>
    %136 = math.exp %135 : vector<32x8xf32>
    %cst_32 = arith.constant dense<0.000000e+00> : vector<32xf32>
    %137 = vector.multi_reduction <add>, %136, %cst_32 [1] : vector<32x8xf32> to vector<32xf32>
    %138 = vector.shape_cast %137 : vector<32xf32> to vector<32x1xf32>
    %139 = tpu.reciprocal %138 {approx = true} : vector<32x1xf32> -> vector<32x1xf32>
    %140 = arith.mulf %138, %139 : vector<32x1xf32>
    %cst_33 = arith.constant 2.000000e+00 : f32
    %141 = vector.broadcast %cst_33 : f32 to vector<32x1xf32>
    %142 = arith.subf %141, %140 : vector<32x1xf32>
    %143 = arith.mulf %139, %142 : vector<32x1xf32>
    %144 = vector.broadcast %143 : vector<32x1xf32> to vector<32x8xf32>
    %145 = arith.mulf %136, %144 : vector<32x8xf32>
    %146 = arith.truncf %145 : vector<32x8xf32> to vector<32x8xbf16>
    %cst_34 = arith.constant dense<0.000000e+00> : vector<32x32xf32>
    %147 = tpu.matmul %146, %110, %cst_34 {dimension_numbers = #tpu.dot_dimension_numbers<[1], [0], [0], [1], [0, 0, 1, 1], [], []>} : vector<32x8xbf16>, vector<8x32xbf16>, vector<32x32xf32> -> vector<32x32xf32>
    %cst_35 = arith.constant 0.000000e+00 : f32
    %148 = vector.broadcast %cst_35 : f32 to vector<8x32xf32>
    %149 = vector.extract_strided_slice %147 {offsets = [0, 0], sizes = [8, 32], strides = [1, 1]} : vector<32x32xf32> to vector<8x32xf32>
    %cst_36 = arith.constant 0.000000e+00 : f32
    %150 = vector.shape_cast %16 : vector<1x32xi1> to vector<1x32xi1>
    %151 = vector.broadcast %150 : vector<1x32xi1> to vector<8x32xi1>
    %152 = vector.broadcast %cst_36 : f32 to vector<8x32xf32>
    %153 = arith.select %151, %149, %152 : vector<8x32xi1>, vector<8x32xf32>
    %154 = arith.addf %148, %153 : vector<8x32xf32>
    %155 = vector.extract_strided_slice %147 {offsets = [8, 0], sizes = [8, 32], strides = [1, 1]} : vector<32x32xf32> to vector<8x32xf32>
    %cst_37 = arith.constant 0.000000e+00 : f32
    %156 = vector.shape_cast %21 : vector<1x32xi1> to vector<1x32xi1>
    %157 = vector.broadcast %156 : vector<1x32xi1> to vector<8x32xi1>
    %158 = vector.broadcast %cst_37 : f32 to vector<8x32xf32>
    %159 = arith.select %157, %155, %158 : vector<8x32xi1>, vector<8x32xf32>
    %160 = arith.addf %154, %159 : vector<8x32xf32>
    %161 = vector.extract_strided_slice %147 {offsets = [16, 0], sizes = [8, 32], strides = [1, 1]} : vector<32x32xf32> to vector<8x32xf32>
    %cst_38 = arith.constant 0.000000e+00 : f32
    %162 = vector.shape_cast %26 : vector<1x32xi1> to vector<1x32xi1>
    %163 = vector.broadcast %162 : vector<1x32xi1> to vector<8x32xi1>
    %164 = vector.broadcast %cst_38 : f32 to vector<8x32xf32>
    %165 = arith.select %163, %161, %164 : vector<8x32xi1>, vector<8x32xf32>
    %166 = arith.addf %160, %165 : vector<8x32xf32>
    %167 = vector.extract_strided_slice %147 {offsets = [24, 0], sizes = [8, 32], strides = [1, 1]} : vector<32x32xf32> to vector<8x32xf32>
    %cst_39 = arith.constant 0.000000e+00 : f32
    %168 = vector.shape_cast %31 : vector<1x32xi1> to vector<1x32xi1>
    %169 = vector.broadcast %168 : vector<1x32xi1> to vector<8x32xi1>
    %170 = vector.broadcast %cst_39 : f32 to vector<8x32xf32>
    %171 = arith.select %169, %167, %170 : vector<8x32xi1>, vector<8x32xf32>
    %172 = arith.addf %166, %171 : vector<8x32xf32>
    %173 = tpu.concatenate %105, %172 in 0 : vector<8x32xf32>, vector<8x32xf32> -> vector<16x32xf32>
    %174 = arith.addf %173, %0 : vector<16x32xf32>
    %cst_40 = arith.constant dense<0.000000e+00> : vector<16xf32>
    %175 = vector.multi_reduction <add>, %174, %cst_40 [1] : vector<16x32xf32> to vector<16xf32>
    %176 = vector.shape_cast %175 : vector<16xf32> to vector<16x1xf32>
    %cst_41 = arith.constant 3.200000e+01 : f32
    %177 = vector.broadcast %cst_41 : f32 to vector<16x1xf32>
    %178 = arith.divf %176, %177 : vector<16x1xf32>
    %179 = vector.broadcast %178 : vector<16x1xf32> to vector<16x32xf32>
    %180 = arith.subf %174, %179 : vector<16x32xf32>
    %181 = arith.mulf %180, %180 : vector<16x32xf32>
    %cst_42 = arith.constant dense<0.000000e+00> : vector<16xf32>
    %182 = vector.multi_reduction <add>, %181, %cst_42 [1] : vector<16x32xf32> to vector<16xf32>
    %183 = vector.shape_cast %182 : vector<16xf32> to vector<16x1xf32>
    %cst_43 = arith.constant 0.0322580636 : f32
    %184 = vector.broadcast %cst_43 : f32 to vector<16x1xf32>
    %185 = arith.mulf %183, %184 : vector<16x1xf32>
    %186 = math.sqrt %185 : vector<16x1xf32>
    %187 = vector.broadcast %178 : vector<16x1xf32> to vector<16x32xf32>
    %188 = arith.subf %174, %187 : vector<16x32xf32>
    %cst_44 = arith.constant 1.000000e-03 : f32
    %189 = vector.broadcast %cst_44 : f32 to vector<16x1xf32>
    %190 = arith.addf %186, %189 : vector<16x1xf32>
    %191 = tpu.reciprocal %190 {approx = true} : vector<16x1xf32> -> vector<16x1xf32>
    %192 = arith.mulf %190, %191 : vector<16x1xf32>
    %cst_45 = arith.constant 2.000000e+00 : f32
    %193 = vector.broadcast %cst_45 : f32 to vector<16x1xf32>
    %194 = arith.subf %193, %192 : vector<16x1xf32>
    %195 = arith.mulf %191, %194 : vector<16x1xf32>
    %196 = vector.broadcast %195 : vector<16x1xf32> to vector<16x32xf32>
    %197 = arith.mulf %188, %196 : vector<16x32xf32>
    %198 = vector.broadcast %3 : vector<1x32xf32> to vector<16x32xf32>
    %199 = arith.mulf %197, %198 : vector<16x32xf32>
    %200 = vector.broadcast %4 : vector<1x32xf32> to vector<16x32xf32>
    %201 = arith.addf %199, %200 : vector<16x32xf32>
    %202 = arith.truncf %201 : vector<16x32xf32> to vector<16x32xbf16>
    %c0_46 = arith.constant 0 : index
    %c0_47 = arith.constant 0 : index
    %203 = vector.load %arg4[%c0_46, %c0_47] : memref<32x32xf32, #tpu.memory_space<vmem>>, vector<32x32xf32>
    %204 = arith.truncf %203 : vector<32x32xf32> to vector<32x32xbf16>
    %cst_48 = arith.constant dense<0.000000e+00> : vector<16x32xf32>
    %205 = tpu.matmul %202, %204, %cst_48 {dimension_numbers = #tpu.dot_dimension_numbers<[1], [0], [0], [1], [0, 0, 1, 1], [], []>} : vector<16x32xbf16>, vector<32x32xbf16>, vector<16x32xf32> -> vector<16x32xf32>
    %206 = arith.truncf %1 : vector<16x32xf32> to vector<16x32xbf16>
    %c0_49 = arith.constant 0 : index
    %c0_50 = arith.constant 0 : index
    %207 = vector.load %arg5[%c0_49, %c0_50] : memref<32x64xf32, #tpu.memory_space<vmem>>, vector<32x64xf32>
    %208 = arith.truncf %207 : vector<32x64xf32> to vector<32x64xbf16>
    %cst_51 = arith.constant dense<0.000000e+00> : vector<16x64xf32>
    %209 = tpu.matmul %206, %208, %cst_51 {dimension_numbers = #tpu.dot_dimension_numbers<[1], [0], [0], [1], [0, 0, 1, 1], [], []>} : vector<16x32xbf16>, vector<32x64xbf16>, vector<16x64xf32> -> vector<16x64xf32>
    %210 = vector.extract_strided_slice %209 {offsets = [0, 0], sizes = [16, 32], strides = [1, 1]} : vector<16x64xf32> to vector<16x32xf32>
    %211 = vector.extract_strided_slice %209 {offsets = [0, 32], sizes = [16, 32], strides = [1, 1]} : vector<16x64xf32> to vector<16x32xf32>
    %212 = vector.extract_strided_slice %205 {offsets = [0, 0], sizes = [8, 32], strides = [1, 1]} : vector<16x32xf32> to vector<8x32xf32>
    %213 = vector.extract_strided_slice %210 {offsets = [0, 0], sizes = [8, 32], strides = [1, 1]} : vector<16x32xf32> to vector<8x32xf32>
    %214 = arith.truncf %213 : vector<8x32xf32> to vector<8x32xbf16>
    %215 = vector.extract_strided_slice %211 {offsets = [0, 0], sizes = [8, 32], strides = [1, 1]} : vector<16x32xf32> to vector<8x32xf32>
    %216 = arith.truncf %215 : vector<8x32xf32> to vector<8x32xbf16>
    %cst_52 = arith.constant 0.000000e+00 : f32
    %217 = vector.shape_cast %16 : vector<1x32xi1> to vector<1x32xi1>
    %218 = vector.broadcast %217 : vector<1x32xi1> to vector<8x32xi1>
    %219 = vector.broadcast %cst_52 : f32 to vector<8x32xf32>
    %220 = arith.select %218, %212, %219 : vector<8x32xi1>, vector<8x32xf32>
    %cst_53 = arith.constant 0.000000e+00 : f32
    %221 = vector.shape_cast %21 : vector<1x32xi1> to vector<1x32xi1>
    %222 = vector.broadcast %221 : vector<1x32xi1> to vector<8x32xi1>
    %223 = vector.broadcast %cst_53 : f32 to vector<8x32xf32>
    %224 = arith.select %222, %212, %223 : vector<8x32xi1>, vector<8x32xf32>
    %cst_54 = arith.constant 0.000000e+00 : f32
    %225 = vector.shape_cast %26 : vector<1x32xi1> to vector<1x32xi1>
    %226 = vector.broadcast %225 : vector<1x32xi1> to vector<8x32xi1>
    %227 = vector.broadcast %cst_54 : f32 to vector<8x32xf32>
    %228 = arith.select %226, %212, %227 : vector<8x32xi1>, vector<8x32xf32>
    %cst_55 = arith.constant 0.000000e+00 : f32
    %229 = vector.shape_cast %31 : vector<1x32xi1> to vector<1x32xi1>
    %230 = vector.broadcast %229 : vector<1x32xi1> to vector<8x32xi1>
    %231 = vector.broadcast %cst_55 : f32 to vector<8x32xf32>
    %232 = arith.select %230, %212, %231 : vector<8x32xi1>, vector<8x32xf32>
    %233 = tpu.concatenate %220, %224, %228, %232 in 0 : vector<8x32xf32>, vector<8x32xf32>, vector<8x32xf32>, vector<8x32xf32> -> vector<32x32xf32>
    %234 = arith.truncf %233 : vector<32x32xf32> to vector<32x32xbf16>
    %cst_56 = arith.constant dense<0.000000e+00> : vector<32x8xf32>
    %235 = tpu.matmul %234, %214, %cst_56 {dimension_numbers = #tpu.dot_dimension_numbers<[1], [1], [0], [0], [0, 0, 1, 0], [], []>} : vector<32x32xbf16>, vector<8x32xbf16>, vector<32x8xf32> -> vector<32x8xf32>
    %cst_57 = arith.constant 0.176776692 : f32
    %236 = vector.broadcast %cst_57 : f32 to vector<32x8xf32>
    %237 = arith.mulf %235, %236 : vector<32x8xf32>
    %cst_58 = arith.constant dense<0xFF800000> : vector<32xf32>
    %238 = vector.multi_reduction <maximumf>, %237, %cst_58 [1] : vector<32x8xf32> to vector<32xf32>
    %239 = vector.shape_cast %238 : vector<32xf32> to vector<32x1xf32>
    %240 = vector.broadcast %239 : vector<32x1xf32> to vector<32x8xf32>
    %241 = arith.subf %237, %240 : vector<32x8xf32>
    %242 = math.exp %241 : vector<32x8xf32>
    %cst_59 = arith.constant dense<0.000000e+00> : vector<32xf32>
    %243 = vector.multi_reduction <add>, %242, %cst_59 [1] : vector<32x8xf32> to vector<32xf32>
    %244 = vector.shape_cast %243 : vector<32xf32> to vector<32x1xf32>
    %245 = tpu.reciprocal %244 {approx = true} : vector<32x1xf32> -> vector<32x1xf32>
    %246 = arith.mulf %244, %245 : vector<32x1xf32>
    %cst_60 = arith.constant 2.000000e+00 : f32
    %247 = vector.broadcast %cst_60 : f32 to vector<32x1xf32>
    %248 = arith.subf %247, %246 : vector<32x1xf32>
    %249 = arith.mulf %245, %248 : vector<32x1xf32>
    %250 = vector.broadcast %249 : vector<32x1xf32> to vector<32x8xf32>
    %251 = arith.mulf %242, %250 : vector<32x8xf32>
    %252 = arith.truncf %251 : vector<32x8xf32> to vector<32x8xbf16>
    %cst_61 = arith.constant dense<0.000000e+00> : vector<32x32xf32>
    %253 = tpu.matmul %252, %216, %cst_61 {dimension_numbers = #tpu.dot_dimension_numbers<[1], [0], [0], [1], [0, 0, 1, 1], [], []>} : vector<32x8xbf16>, vector<8x32xbf16>, vector<32x32xf32> -> vector<32x32xf32>
    %cst_62 = arith.constant 0.000000e+00 : f32
    %254 = vector.broadcast %cst_62 : f32 to vector<8x32xf32>
    %255 = vector.extract_strided_slice %253 {offsets = [0, 0], sizes = [8, 32], strides = [1, 1]} : vector<32x32xf32> to vector<8x32xf32>
    %cst_63 = arith.constant 0.000000e+00 : f32
    %256 = vector.shape_cast %16 : vector<1x32xi1> to vector<1x32xi1>
    %257 = vector.broadcast %256 : vector<1x32xi1> to vector<8x32xi1>
    %258 = vector.broadcast %cst_63 : f32 to vector<8x32xf32>
    %259 = arith.select %257, %255, %258 : vector<8x32xi1>, vector<8x32xf32>
    %260 = arith.addf %254, %259 : vector<8x32xf32>
    %261 = vector.extract_strided_slice %253 {offsets = [8, 0], sizes = [8, 32], strides = [1, 1]} : vector<32x32xf32> to vector<8x32xf32>
    %cst_64 = arith.constant 0.000000e+00 : f32
    %262 = vector.shape_cast %21 : vector<1x32xi1> to vector<1x32xi1>
    %263 = vector.broadcast %262 : vector<1x32xi1> to vector<8x32xi1>
    %264 = vector.broadcast %cst_64 : f32 to vector<8x32xf32>
    %265 = arith.select %263, %261, %264 : vector<8x32xi1>, vector<8x32xf32>
    %266 = arith.addf %260, %265 : vector<8x32xf32>
    %267 = vector.extract_strided_slice %253 {offsets = [16, 0], sizes = [8, 32], strides = [1, 1]} : vector<32x32xf32> to vector<8x32xf32>
    %cst_65 = arith.constant 0.000000e+00 : f32
    %268 = vector.shape_cast %26 : vector<1x32xi1> to vector<1x32xi1>
    %269 = vector.broadcast %268 : vector<1x32xi1> to vector<8x32xi1>
    %270 = vector.broadcast %cst_65 : f32 to vector<8x32xf32>
    %271 = arith.select %269, %267, %270 : vector<8x32xi1>, vector<8x32xf32>
    %272 = arith.addf %266, %271 : vector<8x32xf32>
    %273 = vector.extract_strided_slice %253 {offsets = [24, 0], sizes = [8, 32], strides = [1, 1]} : vector<32x32xf32> to vector<8x32xf32>
    %cst_66 = arith.constant 0.000000e+00 : f32
    %274 = vector.shape_cast %31 : vector<1x32xi1> to vector<1x32xi1>
    %275 = vector.broadcast %274 : vector<1x32xi1> to vector<8x32xi1>
    %276 = vector.broadcast %cst_66 : f32 to vector<8x32xf32>
    %277 = arith.select %275, %273, %276 : vector<8x32xi1>, vector<8x32xf32>
    %278 = arith.addf %272, %277 : vector<8x32xf32>
    %279 = vector.extract_strided_slice %205 {offsets = [8, 0], sizes = [8, 32], strides = [1, 1]} : vector<16x32xf32> to vector<8x32xf32>
    %280 = vector.extract_strided_slice %210 {offsets = [8, 0], sizes = [8, 32], strides = [1, 1]} : vector<16x32xf32> to vector<8x32xf32>
    %281 = arith.truncf %280 : vector<8x32xf32> to vector<8x32xbf16>
    %282 = vector.extract_strided_slice %211 {offsets = [8, 0], sizes = [8, 32], strides = [1, 1]} : vector<16x32xf32> to vector<8x32xf32>
    %283 = arith.truncf %282 : vector<8x32xf32> to vector<8x32xbf16>
    %cst_67 = arith.constant 0.000000e+00 : f32
    %284 = vector.shape_cast %16 : vector<1x32xi1> to vector<1x32xi1>
    %285 = vector.broadcast %284 : vector<1x32xi1> to vector<8x32xi1>
    %286 = vector.broadcast %cst_67 : f32 to vector<8x32xf32>
    %287 = arith.select %285, %279, %286 : vector<8x32xi1>, vector<8x32xf32>
    %cst_68 = arith.constant 0.000000e+00 : f32
    %288 = vector.shape_cast %21 : vector<1x32xi1> to vector<1x32xi1>
    %289 = vector.broadcast %288 : vector<1x32xi1> to vector<8x32xi1>
    %290 = vector.broadcast %cst_68 : f32 to vector<8x32xf32>
    %291 = arith.select %289, %279, %290 : vector<8x32xi1>, vector<8x32xf32>
    %cst_69 = arith.constant 0.000000e+00 : f32
    %292 = vector.shape_cast %26 : vector<1x32xi1> to vector<1x32xi1>
    %293 = vector.broadcast %292 : vector<1x32xi1> to vector<8x32xi1>
    %294 = vector.broadcast %cst_69 : f32 to vector<8x32xf32>
    %295 = arith.select %293, %279, %294 : vector<8x32xi1>, vector<8x32xf32>
    %cst_70 = arith.constant 0.000000e+00 : f32
    %296 = vector.shape_cast %31 : vector<1x32xi1> to vector<1x32xi1>
    %297 = vector.broadcast %296 : vector<1x32xi1> to vector<8x32xi1>
    %298 = vector.broadcast %cst_70 : f32 to vector<8x32xf32>
    %299 = arith.select %297, %279, %298 : vector<8x32xi1>, vector<8x32xf32>
    %300 = tpu.concatenate %287, %291, %295, %299 in 0 : vector<8x32xf32>, vector<8x32xf32>, vector<8x32xf32>, vector<8x32xf32> -> vector<32x32xf32>
    %301 = arith.truncf %300 : vector<32x32xf32> to vector<32x32xbf16>
    %cst_71 = arith.constant dense<0.000000e+00> : vector<32x8xf32>
    %302 = tpu.matmul %301, %281, %cst_71 {dimension_numbers = #tpu.dot_dimension_numbers<[1], [1], [0], [0], [0, 0, 1, 0], [], []>} : vector<32x32xbf16>, vector<8x32xbf16>, vector<32x8xf32> -> vector<32x8xf32>
    %cst_72 = arith.constant 0.176776692 : f32
    %303 = vector.broadcast %cst_72 : f32 to vector<32x8xf32>
    %304 = arith.mulf %302, %303 : vector<32x8xf32>
    %cst_73 = arith.constant dense<0xFF800000> : vector<32xf32>
    %305 = vector.multi_reduction <maximumf>, %304, %cst_73 [1] : vector<32x8xf32> to vector<32xf32>
    %306 = vector.shape_cast %305 : vector<32xf32> to vector<32x1xf32>
    %307 = vector.broadcast %306 : vector<32x1xf32> to vector<32x8xf32>
    %308 = arith.subf %304, %307 : vector<32x8xf32>
    %309 = math.exp %308 : vector<32x8xf32>
    %cst_74 = arith.constant dense<0.000000e+00> : vector<32xf32>
    %310 = vector.multi_reduction <add>, %309, %cst_74 [1] : vector<32x8xf32> to vector<32xf32>
    %311 = vector.shape_cast %310 : vector<32xf32> to vector<32x1xf32>
    %312 = tpu.reciprocal %311 {approx = true} : vector<32x1xf32> -> vector<32x1xf32>
    %313 = arith.mulf %311, %312 : vector<32x1xf32>
    %cst_75 = arith.constant 2.000000e+00 : f32
    %314 = vector.broadcast %cst_75 : f32 to vector<32x1xf32>
    %315 = arith.subf %314, %313 : vector<32x1xf32>
    %316 = arith.mulf %312, %315 : vector<32x1xf32>
    %317 = vector.broadcast %316 : vector<32x1xf32> to vector<32x8xf32>
    %318 = arith.mulf %309, %317 : vector<32x8xf32>
    %319 = arith.truncf %318 : vector<32x8xf32> to vector<32x8xbf16>
    %cst_76 = arith.constant dense<0.000000e+00> : vector<32x32xf32>
    %320 = tpu.matmul %319, %283, %cst_76 {dimension_numbers = #tpu.dot_dimension_numbers<[1], [0], [0], [1], [0, 0, 1, 1], [], []>} : vector<32x8xbf16>, vector<8x32xbf16>, vector<32x32xf32> -> vector<32x32xf32>
    %cst_77 = arith.constant 0.000000e+00 : f32
    %321 = vector.broadcast %cst_77 : f32 to vector<8x32xf32>
    %322 = vector.extract_strided_slice %320 {offsets = [0, 0], sizes = [8, 32], strides = [1, 1]} : vector<32x32xf32> to vector<8x32xf32>
    %cst_78 = arith.constant 0.000000e+00 : f32
    %323 = vector.shape_cast %16 : vector<1x32xi1> to vector<1x32xi1>
    %324 = vector.broadcast %323 : vector<1x32xi1> to vector<8x32xi1>
    %325 = vector.broadcast %cst_78 : f32 to vector<8x32xf32>
    %326 = arith.select %324, %322, %325 : vector<8x32xi1>, vector<8x32xf32>
    %327 = arith.addf %321, %326 : vector<8x32xf32>
    %328 = vector.extract_strided_slice %320 {offsets = [8, 0], sizes = [8, 32], strides = [1, 1]} : vector<32x32xf32> to vector<8x32xf32>
    %cst_79 = arith.constant 0.000000e+00 : f32
    %329 = vector.shape_cast %21 : vector<1x32xi1> to vector<1x32xi1>
    %330 = vector.broadcast %329 : vector<1x32xi1> to vector<8x32xi1>
    %331 = vector.broadcast %cst_79 : f32 to vector<8x32xf32>
    %332 = arith.select %330, %328, %331 : vector<8x32xi1>, vector<8x32xf32>
    %333 = arith.addf %327, %332 : vector<8x32xf32>
    %334 = vector.extract_strided_slice %320 {offsets = [16, 0], sizes = [8, 32], strides = [1, 1]} : vector<32x32xf32> to vector<8x32xf32>
    %cst_80 = arith.constant 0.000000e+00 : f32
    %335 = vector.shape_cast %26 : vector<1x32xi1> to vector<1x32xi1>
    %336 = vector.broadcast %335 : vector<1x32xi1> to vector<8x32xi1>
    %337 = vector.broadcast %cst_80 : f32 to vector<8x32xf32>
    %338 = arith.select %336, %334, %337 : vector<8x32xi1>, vector<8x32xf32>
    %339 = arith.addf %333, %338 : vector<8x32xf32>
    %340 = vector.extract_strided_slice %320 {offsets = [24, 0], sizes = [8, 32], strides = [1, 1]} : vector<32x32xf32> to vector<8x32xf32>
    %cst_81 = arith.constant 0.000000e+00 : f32
    %341 = vector.shape_cast %31 : vector<1x32xi1> to vector<1x32xi1>
    %342 = vector.broadcast %341 : vector<1x32xi1> to vector<8x32xi1>
    %343 = vector.broadcast %cst_81 : f32 to vector<8x32xf32>
    %344 = arith.select %342, %340, %343 : vector<8x32xi1>, vector<8x32xf32>
    %345 = arith.addf %339, %344 : vector<8x32xf32>
    %346 = tpu.concatenate %278, %345 in 0 : vector<8x32xf32>, vector<8x32xf32> -> vector<16x32xf32>
    %347 = arith.addf %346, %201 : vector<16x32xf32>
    %cst_82 = arith.constant dense<0.000000e+00> : vector<16xf32>
    %348 = vector.multi_reduction <add>, %347, %cst_82 [1] : vector<16x32xf32> to vector<16xf32>
    %349 = vector.shape_cast %348 : vector<16xf32> to vector<16x1xf32>
    %cst_83 = arith.constant 3.200000e+01 : f32
    %350 = vector.broadcast %cst_83 : f32 to vector<16x1xf32>
    %351 = arith.divf %349, %350 : vector<16x1xf32>
    %352 = vector.broadcast %351 : vector<16x1xf32> to vector<16x32xf32>
    %353 = arith.subf %347, %352 : vector<16x32xf32>
    %354 = arith.mulf %353, %353 : vector<16x32xf32>
    %cst_84 = arith.constant dense<0.000000e+00> : vector<16xf32>
    %355 = vector.multi_reduction <add>, %354, %cst_84 [1] : vector<16x32xf32> to vector<16xf32>
    %356 = vector.shape_cast %355 : vector<16xf32> to vector<16x1xf32>
    %cst_85 = arith.constant 0.0322580636 : f32
    %357 = vector.broadcast %cst_85 : f32 to vector<16x1xf32>
    %358 = arith.mulf %356, %357 : vector<16x1xf32>
    %359 = math.sqrt %358 : vector<16x1xf32>
    %360 = vector.broadcast %351 : vector<16x1xf32> to vector<16x32xf32>
    %361 = arith.subf %347, %360 : vector<16x32xf32>
    %cst_86 = arith.constant 1.000000e-03 : f32
    %362 = vector.broadcast %cst_86 : f32 to vector<16x1xf32>
    %363 = arith.addf %359, %362 : vector<16x1xf32>
    %364 = tpu.reciprocal %363 {approx = true} : vector<16x1xf32> -> vector<16x1xf32>
    %365 = arith.mulf %363, %364 : vector<16x1xf32>
    %cst_87 = arith.constant 2.000000e+00 : f32
    %366 = vector.broadcast %cst_87 : f32 to vector<16x1xf32>
    %367 = arith.subf %366, %365 : vector<16x1xf32>
    %368 = arith.mulf %364, %367 : vector<16x1xf32>
    %369 = vector.broadcast %368 : vector<16x1xf32> to vector<16x32xf32>
    %370 = arith.mulf %361, %369 : vector<16x32xf32>
    %371 = vector.broadcast %5 : vector<1x32xf32> to vector<16x32xf32>
    %372 = arith.mulf %370, %371 : vector<16x32xf32>
    %373 = vector.broadcast %6 : vector<1x32xf32> to vector<16x32xf32>
    %374 = arith.addf %372, %373 : vector<16x32xf32>
    %375 = arith.truncf %374 : vector<16x32xf32> to vector<16x32xbf16>
    %c0_88 = arith.constant 0 : index
    %c0_89 = arith.constant 0 : index
    %376 = vector.load %arg6[%c0_88, %c0_89] : memref<32x64xf32, #tpu.memory_space<vmem>>, vector<32x64xf32>
    %377 = arith.truncf %376 : vector<32x64xf32> to vector<32x64xbf16>
    %cst_90 = arith.constant dense<0.000000e+00> : vector<16x64xf32>
    %378 = tpu.matmul %375, %377, %cst_90 {dimension_numbers = #tpu.dot_dimension_numbers<[1], [0], [0], [1], [0, 0, 1, 1], [], []>} : vector<16x32xbf16>, vector<32x64xbf16>, vector<16x64xf32> -> vector<16x64xf32>
    %379 = vector.broadcast %10 : vector<1x64xf32> to vector<16x64xf32>
    %380 = arith.addf %378, %379 : vector<16x64xf32>
    %cst_91 = arith.constant 0.000000e+00 : f32
    %381 = vector.broadcast %cst_91 : f32 to vector<16x64xf32>
    %382 = arith.maximumf %380, %381 : vector<16x64xf32>
    %383 = arith.truncf %382 : vector<16x64xf32> to vector<16x64xbf16>
    %c0_92 = arith.constant 0 : index
    %c0_93 = arith.constant 0 : index
    %384 = vector.load %arg7[%c0_92, %c0_93] : memref<64x32xf32, #tpu.memory_space<vmem>>, vector<64x32xf32>
    %385 = arith.truncf %384 : vector<64x32xf32> to vector<64x32xbf16>
    %cst_94 = arith.constant dense<0.000000e+00> : vector<16x32xf32>
    %386 = tpu.matmul %383, %385, %cst_94 {dimension_numbers = #tpu.dot_dimension_numbers<[1], [0], [0], [1], [0, 0, 1, 1], [], []>} : vector<16x64xbf16>, vector<64x32xbf16>, vector<16x32xf32> -> vector<16x32xf32>
    %387 = vector.broadcast %9 : vector<1x32xf32> to vector<16x32xf32>
    %388 = arith.addf %386, %387 : vector<16x32xf32>
    %389 = arith.addf %388, %374 : vector<16x32xf32>
    %cst_95 = arith.constant dense<0.000000e+00> : vector<16xf32>
    %390 = vector.multi_reduction <add>, %389, %cst_95 [1] : vector<16x32xf32> to vector<16xf32>
    %391 = vector.shape_cast %390 : vector<16xf32> to vector<16x1xf32>
    %cst_96 = arith.constant 3.200000e+01 : f32
    %392 = vector.broadcast %cst_96 : f32 to vector<16x1xf32>
    %393 = arith.divf %391, %392 : vector<16x1xf32>
    %394 = vector.broadcast %393 : vector<16x1xf32> to vector<16x32xf32>
    %395 = arith.subf %389, %394 : vector<16x32xf32>
    %396 = arith.mulf %395, %395 : vector<16x32xf32>
    %cst_97 = arith.constant dense<0.000000e+00> : vector<16xf32>
    %397 = vector.multi_reduction <add>, %396, %cst_97 [1] : vector<16x32xf32> to vector<16xf32>
    %398 = vector.shape_cast %397 : vector<16xf32> to vector<16x1xf32>
    %cst_98 = arith.constant 0.0322580636 : f32
    %399 = vector.broadcast %cst_98 : f32 to vector<16x1xf32>
    %400 = arith.mulf %398, %399 : vector<16x1xf32>
    %401 = math.sqrt %400 : vector<16x1xf32>
    %402 = vector.broadcast %393 : vector<16x1xf32> to vector<16x32xf32>
    %403 = arith.subf %389, %402 : vector<16x32xf32>
    %cst_99 = arith.constant 1.000000e-03 : f32
    %404 = vector.broadcast %cst_99 : f32 to vector<16x1xf32>
    %405 = arith.addf %401, %404 : vector<16x1xf32>
    %406 = tpu.reciprocal %405 {approx = true} : vector<16x1xf32> -> vector<16x1xf32>
    %407 = arith.mulf %405, %406 : vector<16x1xf32>
    %cst_100 = arith.constant 2.000000e+00 : f32
    %408 = vector.broadcast %cst_100 : f32 to vector<16x1xf32>
    %409 = arith.subf %408, %407 : vector<16x1xf32>
    %410 = arith.mulf %406, %409 : vector<16x1xf32>
    %411 = vector.broadcast %410 : vector<16x1xf32> to vector<16x32xf32>
    %412 = arith.mulf %403, %411 : vector<16x32xf32>
    %413 = vector.broadcast %7 : vector<1x32xf32> to vector<16x32xf32>
    %414 = arith.mulf %412, %413 : vector<16x32xf32>
    %415 = vector.broadcast %8 : vector<1x32xf32> to vector<16x32xf32>
    %416 = arith.addf %414, %415 : vector<16x32xf32>
    %c0_101 = arith.constant 0 : index
    %c0_102 = arith.constant 0 : index
    %417 = vector.load %arg9[%c0_101, %c0_102] : memref<16x32xf32, #tpu.memory_space<vmem>>, vector<16x32xf32>
    tpu.vector_store %arg9[%c0_101, %c0_102], %416 {strides = array<i32>} : memref<16x32xf32, #tpu.memory_space<vmem>>, vector<16x32xf32>,
    return
  }
  func.func @transform_0(%arg0: i32) -> (i32, i32) {
    %c0_i32 = arith.constant 0 : i32
    %c0_i32_0 = arith.constant 0 : i32
    %c0_i32_1 = arith.constant 0 : i32
    return %c0_i32, %c0_i32_0 : i32, i32
  }
  func.func @transform_1(%arg0: i32) -> (i32, i32) {
    %c0_i32 = arith.constant 0 : i32
    %c0_i32_0 = arith.constant 0 : i32
    %c0_i32_1 = arith.constant 0 : i32
    return %c0_i32, %c0_i32_0 : i32, i32
  }
  func.func @transform_2(%arg0: i32) -> (i32, i32) {
    %c0_i32 = arith.constant 0 : i32
    %c0_i32_0 = arith.constant 0 : i32
    %c0_i32_1 = arith.constant 0 : i32
    return %c0_i32, %c0_i32_0 : i32, i32
  }
  func.func @transform_3(%arg0: i32) -> (i32, i32) {
    %c0_i32 = arith.constant 0 : i32
    %c0_i32_0 = arith.constant 0 : i32
    %c0_i32_1 = arith.constant 0 : i32
    return %c0_i32, %c0_i32_0 : i32, i32
  }
  func.func @transform_4(%arg0: i32) -> (i32, i32) {
    %c0_i32 = arith.constant 0 : i32
    %c0_i32_0 = arith.constant 0 : i32
    %c0_i32_1 = arith.constant 0 : i32
    return %c0_i32, %c0_i32_0 : i32, i32
  }
  func.func @transform_5(%arg0: i32) -> (i32, i32) {
    %c0_i32 = arith.constant 0 : i32
    %c0_i32_0 = arith.constant 0 : i32
    %c0_i32_1 = arith.constant 0 : i32
    return %c0_i32, %c0_i32_0 : i32, i32
  }
  func.func @transform_6(%arg0: i32) -> (i32, i32) {
    %c0_i32 = arith.constant 0 : i32
    %c0_i32_0 = arith.constant 0 : i32
    %c0_i32_1 = arith.constant 0 : i32
    return %c0_i32, %c0_i32_0 : i32, i32
  }
  func.func @transform_7(%arg0: i32) -> (i32, i32) {
    %c0_i32 = arith.constant 0 : i32
    %c0_i32_0 = arith.constant 0 : i32
    %c0_i32_1 = arith.constant 0 : i32
    return %c0_i32, %c0_i32_0 : i32, i32
  }
  func.func @transform_8(%arg0: i32) -> (i32, i32) {
    %c0_i32 = arith.constant 0 : i32
    %c0_i32_0 = arith.constant 0 : i32
    %c0_i32_1 = arith.constant 0 : i32
    return %c0_i32, %c0_i32_0 : i32, i32
  }
}

</mosaic_0001>

<bundles_post_ra>
// kernel: tpu_custom_call.1
= control target key start
LH: loop header
LB: loop body
LE: loop exit
PB: predicated region body
PF: predicated region fallthrough
CT: control target
= control target key end

     0   :  { %13 = vsyncpa [#allocation3], 0  ;;  %s2170_s0 = inlined_call_operand.hbm [shape: f32[16,32], index: 0, kind: input, shape index: {}]   ;;  %s2171_s1 = inlined_call_operand.hbm [shape: f32[16,32], index: 1, kind: input, shape index: {}]   ;;  %s2172_s2 = inlined_call_operand.vmem [shape: f32[32,96], index: 2, kind: input, shape index: {}]   ;;  %s2173_s3 = inlined_call_operand.vmem [shape: f32[32,32], index: 3, kind: input, shape index: {}]   ;;  %s2174_s4 = inlined_call_operand.vmem [shape: f32[32,64], index: 4, kind: input, shape index: {}]   ;;  %s2175_s5 = inlined_call_operand.hbm [shape: f32[32,64], index: 5, kind: input, shape index: {}]   ;;  %s2176_s6 = inlined_call_operand.vmem [shape: f32[64,32], index: 6, kind: input, shape index: {}]   ;;  %s2177_s7 = inlined_call_operand.vmem [shape: f32[8,64], index: 7, kind: input, shape index: {}]   ;;  %s2178_s8 = inlined_call_operand.hbm [shape: f32[16,32], index: 8, kind: output, shape index: {}]  }
   0x1   :  { %14 = vsyncpa [#allocation6], 0 }
   0x2   :  { %15 = vsyncpa [#allocation4], 0  ;;  %s1709_s27 = smov [#allocation5]   ;;  %s1710_s29 = smov [#allocation2]  }
   0x3   :  { %s33_s28 = sshll.u32 %s1709_s27, 4  ;;  %s21_s30 = sshll.u32 %s1710_s29, 4  ;;  %s34_s28 = int_to_ptr.vmem [resolvable:$true] %s33_s28  ;;  %s22_s30 = int_to_ptr.vmem [resolvable:$true] %s21_s30 }
   0x4   :  { %s1631_s9 = scalar_lea.vmem %s34_s28, 256  ;;  %p1636_p1 = scmp.lt.s32.totalorder %s34_s28, %s34_s28 }
   0x5   :  { %p1632_p0 = scmp.ne.s32.totalorder %s34_s28, %s1631_s9  ;;  %p1637_p2 = scmp.lt.s32.totalorder %s1631_s9, %s1631_s9 }
   0x7   :  { %p1638_p3 = por %p1637_p2, %p1636_p1 }
   0x9   :  { %p1639_p4 = pnand %p1638_p3, %p1632_p0 }
   0xb   :  { %1642 = shalt.err (!%p1639_p4)
}
   0xc   :  { %s1711_s10 = smov 128   ;;  %s1712_s11 = smov 8  }
   0xd   :  { %39 = dma.hbm_to_vmem [thread:$0]  %s2171_s1, 256, %s34_s28, [#allocation6], %s1711_s10, %s1711_s10, %s1712_s11  }
   0xe   :  { %s1651_s14 = scalar_lea.vmem %s22_s30, 256  ;;  %p1656_p6 = scmp.lt.s32.totalorder %s22_s30, %s22_s30 }
   0xf   :  { %p1652_p5 = scmp.ne.s32.totalorder %s22_s30, %s1651_s14  ;;  %p1657_p7 = scmp.lt.s32.totalorder %s1651_s14, %s1651_s14 }
  0x11   :  { %p1658_p8 = por %p1657_p7, %p1656_p6 }
  0x13   :  { %p1659_p9 = pnand %p1658_p8, %p1652_p5 }
  0x15   :  { %1662 = shalt.err (!%p1659_p9)
}
  0x16   :  { %27 = dma.hbm_to_vmem [thread:$0]  %s2170_s0, 256, %s22_s30, [#allocation3], %s1711_s10, %s1711_s10, %s1712_s11  }
  0x17   :  { %s1713_s17 = smov [#allocation7]  }
  0x18   :  { %s51_s18 = sshll.u32 %s1713_s17, 4  ;;  %s52_s18 = int_to_ptr.vmem [resolvable:$true] %s51_s18 }
  0x19   :  { %s1671_s19 = scalar_lea.vmem %s52_s18, 512  ;;  %p1676_p11 = scmp.lt.s32.totalorder %s52_s18, %s52_s18 }
  0x1a   :  { %p1672_p10 = scmp.ne.s32.totalorder %s52_s18, %s1671_s19  ;;  %p1677_p12 = scmp.lt.s32.totalorder %s1671_s19, %s1671_s19 }
  0x1c   :  { %p1678_p13 = por %p1677_p12, %p1676_p11 }
  0x1e   :  { %p1679_p0 = pnand %p1678_p13, %p1672_p10 }
  0x20   :  { %1682 = shalt.err (!%p1679_p0)
}
  0x21   :  { %57 = dma.hbm_to_vmem [thread:$0]  %s2175_s5, 512, %s52_s18, [#allocation6], %s1711_s10, %s1711_s10, %s1712_s11  }
  0x22   :  { %1703 = dma.done.wait [#allocation3], 256  }
  0x23   :  { %1704 = vsyncadd [#allocation3], 4294967040 }
  0x24   :  { %1705 = dma.done.wait [#allocation6], 768  }
  0x25   :  { %1706 = vsyncadd [#allocation6], 4294966528  ;;  %v1714_v0 = vmov 0.0   ;;  %vm1715_vm0 = vmmov 0   ;;  %v94_v1 = vld [vmem:[%s2172_s2 + $0x10] sm:$0xff]  ;;  %v95_v2 = vld [vmem:[%s2172_s2 + $0x18] sm:$0xff]  ;;  %v77_v10 = vlaneseq }
  0x26   :  { %1425 = vmatprep.subr.bf16.mxu1 %v1714_v0  ;;  %1429 = vmatprep.mubr.msk.bf16.mxu1 %vm1715_vm0, %v1714_v0  ;;  %v92_v3 = vld [vmem:[%s2172_s2] sm:$0xff]  ;;  %v97_v4 = vpack.c.bf16 %v95_v2, %v94_v1  ;;  %v93_v5 = vld [vmem:[%s2172_s2 + $0x8] sm:$0xff]  ;;  %vm98_vm1 = vcmask 261120   ;;  %s1716_s2 = smov 96   ;;  %vm223_vm12 = vcmask 64512   ;;  %s1717_s27 = smov 64  }
  0x27   :  { %v96_v6 = vpack.c.bf16 %v93_v5, %v92_v3  ;;  %v1797_v7 = vld [vmem:[#allocation2] sm:$0xff]  ;;  %v1799_v8 = vld [vmem:[#allocation2 + $0x8] sm:$0xff]  ;;  %v1806_v11 = vand.u32 127, %v77_v10  ;;  %vm290_vm13 = vcmask 1043456  }
  0x28   :  { %1426 = vmatpush3.bf16.msra.mxu1 %v97_v4  ;;  %v91_v9 = vpack.c.bf16 %v1799_v8, %v1797_v7 }
  0x29   :  { %1427 = vmatprep.subr.bf16.mxu1 %v1714_v0  ;;  %vm82_vm2 = vcmp.ge.s32.totalorder %v1806_v11, 8  ;;  %vm83_vm3 = vcmp.lt.s32.totalorder %v1806_v11, 16  ;;  %vm80_vm4 = vcmp.lt.s32.totalorder %v1806_v11, 8  ;;  %vm85_vm6 = vcmp.ge.s32.totalorder %v1806_v11, 16 }
  0x2a   :  { %vm1811_vm5 = vmand %vm82_vm2, %vm83_vm3  ;;  %vm86_vm7 = vcmp.lt.s32.totalorder %v1806_v11, 24  ;;  %vm88_vm8 = vcmp.ge.s32.totalorder %v1806_v11, 24  ;;  %vm89_vm9 = vcmp.lt.s32.totalorder %v1806_v11, 32 }
  0x2b   :  { %vm1832_vm10 = vmand %vm85_vm6, %vm86_vm7  ;;  %vm1238_vm7 = vcmask 523264  }
  0x2c   :  { %1428 = vmatpush3.bf16.msra.mxu1 %v96_v6  ;;  %vm1836_vm11 = vmand %vm88_vm8, %vm89_vm9 }
  0x2f   :  { %1430 = vmatmul.mubr.msk.bf16.vlgmr.msra.gmra.mxu1 %vm98_vm1, %v91_v9 }
  0xef   :  { %v136_v13 = vpop.f32.mrf.mxu1 }
  0xf0   :  { %v1815_v14 = vpack.c.bf16 %v136_v13, %v136_v13  ;;  %v146_v15 = vsel %vm80_vm4, %v136_v13, 0.0  ;;  %v149_v17 = vsel %vm1811_vm5, %v136_v13, 0.0  ;;  %v152_v26 = vsel %vm1832_vm10, %v136_v13, 0.0 }
  0xf1   :  { %v1431_v16 = vpop.f32.mrf.mxu1  ;;  %v156_v18 = vpack.c.bf16 %v149_v17, %v146_v15  ;;  %v155_v27 = vsel %vm1836_vm11, %v136_v13, 0.0 }
  0xf2   :  { %159 = vrot.lane.b32.xlu0 %v1815_v14, %s1716_s2  ;;  %v157_v31 = vpack.c.bf16 %v155_v27, %v152_v26 }
  0xf3   :  { %v139_v19 = vpop.f32.mrf.mxu1  ;;  %1435 = vmatprep.mubr.msk.bf16.mxu1 %vm98_vm1, %v156_v18 }
  0xf4   :  { %v1824_v20 = vpack.c.bf16 %v139_v19, %v139_v19  ;;  %v352_v29 = vsel %vm80_vm4, %v139_v19, 0.0  ;;  %v353_v30 = vsel %vm1811_vm5, %v139_v19, 0.0  ;;  %v354_v34 = vsel %vm1832_vm10, %v139_v19, 0.0 }
  0xf5   :  { %v1432_v21 = vpop.f32.mrf.mxu1  ;;  %v356_v32 = vpack.c.bf16 %v353_v30, %v352_v29  ;;  %v355_v35 = vsel %vm1836_vm11, %v139_v19, 0.0 }
  0xf6   :  { %359 = vrot.lane.b32.xlu0 %v1824_v20, %s1716_s2  ;;  %v357_v36 = vpack.c.bf16 %v355_v35, %v354_v34 }
 0x164   :  { %v160_v23 = vpop.permute.xlu0 %159 }
 0x165   :  { %v168_v25 = vsel %vm98_vm1, %v160_v23, 0  ;;  %1517 = vmatprep.subr.msk.bf16.mxu1 %vm98_vm1, %v160_v23 }
 0x166   :  { %1434 = vmatpush3.bf16.xpose.msra.mxu1 %v168_v25 }
 0x168   :  { %v360_v28 = vpop.permute.xlu0 %359 }
 0x169   :  { %1519 = vmatprep.subr.msk.bf16.mxu1 %vm98_vm1, %v360_v28  ;;  %v368_v33 = vsel %vm98_vm1, %v360_v28, 0 }
 0x16d   :  { %1436 = vmatmul.mubr.msk.bf16.vlgmr.msra.gmra.mxu1 %vm98_vm1, %v157_v31 }
 0x16e   :  { %1446 = vmatpush3.bf16.xpose.msra.mxu1 %v368_v33  ;;  %1447 = vmatprep.mubr.msk.bf16.mxu1 %vm98_vm1, %v356_v32 }
 0x16f   :  { %1457 = vmatprep.subr.bf16.mxu1 %v1714_v0 }
 0x175   :  { %1448 = vmatmul.mubr.msk.bf16.vlgmr.msra.gmra.mxu1 %vm98_vm1, %v357_v36 }
 0x176   :  { %1461 = vmatprep.mubr.msk.bf16.mxu1 %vm1715_vm0, %v1714_v0 }
 0x22d   :  { %v1437_v37 = vpop.f32.mrf.mxu1 }
 0x22e   :  { %v221_v38 = vmul.f32 0.17677669, %v1437_v37 }
 0x22f   :  { %v204_v39 = vpop.f32.mrf.mxu1 }
 0x230   :  { %v219_v40 = vmul.f32 0.17677669, %v204_v39  ;;  %v230_v41 = vsel %vm223_vm12, %v221_v38, -inf }
 0x231   :  { %231 = vmax.xlane.f32.xlu0 %v230_v41  ;;  %v1438_v42 = vpop.f32.mrf.mxu1 }
 0x232   :  { %v222_v43 = vmul.f32 0.17677669, %v1438_v42  ;;  %v224_v44 = vsel %vm223_vm12, %v219_v40, -inf }
 0x233   :  { %225 = vmax.xlane.f32.xlu1 %v224_v44  ;;  %v207_v45 = vpop.f32.mrf.mxu1 }
 0x234   :  { %v220_v47 = vmul.f32 0.17677669, %v207_v45  ;;  %v233_v48 = vsel %vm223_vm12, %v222_v43, -inf }
 0x235   :  { %v1449_v46 = vpop.f32.mrf.mxu1 }
 0x236   :  { %v421_v50 = vmul.f32 0.17677669, %v1449_v46  ;;  %v227_v51 = vsel %vm223_vm12, %v220_v47, -inf }
 0x237   :  { %234 = vmax.xlane.f32.xlu1 %v233_v48  ;;  %v404_v49 = vpop.f32.mrf.mxu1 }
 0x238   :  { %v419_v53 = vmul.f32 0.17677669, %v404_v49  ;;  %v429_v54 = vsel %vm223_vm12, %v421_v50, -inf }
 0x239   :  { %v1450_v52 = vpop.f32.mrf.mxu1 }
 0x23a   :  { %v423_v57 = vsel %vm223_vm12, %v419_v53, -inf  ;;  %v422_v58 = vmul.f32 0.17677669, %v1450_v52 }
 0x23b   :  { %228 = vmax.xlane.f32.xlu1 %v227_v51  ;;  %v407_v55 = vpop.f32.mrf.mxu1 }
 0x23c   :  { %v420_v56 = vmul.f32 0.17677669, %v407_v55  ;;  %v432_v60 = vsel %vm223_vm12, %v422_v58, -inf }
 0x23e   :  { %v426_v59 = vsel %vm223_vm12, %v420_v56, -inf }
 0x23f   :  { %430 = vmax.xlane.f32.xlu1 %v429_v54 }
 0x243   :  { %424 = vmax.xlane.f32.xlu1 %v423_v57 }
 0x247   :  { %427 = vmax.xlane.f32.xlu1 %v426_v59 }
 0x24b   :  { %433 = vmax.xlane.f32.xlu1 %v432_v60 }
 0x2ba   :  { %v232_v61 = vpop.xlane.xlu0 %231 }
 0x2bb   :  { %v238_v62 = vsub.f32 %v221_v38, %v232_v61 }
 0x2bc   :  { %v226_v63 = vpop.xlane.xlu1 %225 }
 0x2bd   :  { %v244_v1 = vmul.f32 1.442695, %v238_v62  ;;  %v236_v2 = vsub.f32 %v219_v40, %v226_v63 }
 0x2bf   :  { %1535 = vpow2.f32 %v244_v1  ;;  %v240_v3 = vmul.f32 1.442695, %v236_v2 }
 0x2c0   :  { %v235_v4 = vpop.xlane.xlu1 %234 }
 0x2c1   :  { %1537 = vpow2.f32 %v240_v3  ;;  %v239_v5 = vsub.f32 %v222_v43, %v235_v4 }
 0x2c3   :  { %v246_v6 = vmul.f32 1.442695, %v239_v5 }
 0x2c4   :  { %v229_v9 = vpop.xlane.xlu1 %228 }
 0x2c5   :  { %1539 = vpow2.f32 %v246_v6  ;;  %v237_v13 = vsub.f32 %v220_v47, %v229_v9 }
 0x2c7   :  { %v242_v15 = vmul.f32 1.442695, %v237_v13 }
 0x2c8   :  { %v431_v16 = vpop.xlane.xlu1 %430 }
 0x2c9   :  { %1541 = vpow2.f32 %v242_v15  ;;  %v437_v17 = vsub.f32 %v421_v50, %v431_v16 }
 0x2cb   :  { %v443_v18 = vmul.f32 1.442695, %v437_v17 }
 0x2cc   :  { %v1870_v19 = vpop.eup %1535  ;;  %v425_v21 = vpop.xlane.xlu1 %424 }
 0x2cd   :  { %1543 = vpow2.f32 %v443_v18  ;;  %v435_v23 = vsub.f32 %v419_v53, %v425_v21  ;;  %v254_v25 = vsel %vm223_vm12, %v1870_v19, 0.0 }
 0x2ce   :  { %v1874_v26 = vpop.eup %1537  ;;  %255 = vadd.xlane.f32.xlu1 %v254_v25 }
 0x2cf   :  { %v439_v27 = vmul.f32 1.442695, %v435_v23  ;;  %v248_v30 = vsel %vm223_vm12, %v1874_v26, 0.0 }
 0x2d0   :  { %v428_v28 = vpop.xlane.xlu1 %427 }
 0x2d1   :  { %1545 = vpow2.f32 %v439_v27  ;;  %v436_v29 = vsub.f32 %v420_v56, %v428_v28 }
 0x2d2   :  { %v1878_v31 = vpop.eup %1539  ;;  %249 = vadd.xlane.f32.xlu1 %v248_v30 }
 0x2d3   :  { %v441_v32 = vmul.f32 1.442695, %v436_v29  ;;  %v257_v33 = vsel %vm223_vm12, %v1878_v31, 0.0 }
 0x2d4   :  { %258 = vadd.xlane.f32.xlu0 %v257_v33  ;;  %v434_v34 = vpop.xlane.xlu1 %433 }
 0x2d5   :  { %1547 = vpow2.f32 %v441_v32  ;;  %v438_v35 = vsub.f32 %v422_v58, %v434_v34 }
 0x2d6   :  { %v1542_v36 = vpop.eup %1541 }
 0x2d7   :  { %v445_v37 = vmul.f32 1.442695, %v438_v35  ;;  %v251_v38 = vsel %vm223_vm12, %v1542_v36, 0.0 }
 0x2d8   :  { %252 = vadd.xlane.f32.xlu1 %v251_v38 }
 0x2d9   :  { %1549 = vpow2.f32 %v445_v37 }
 0x2da   :  { %v1883_v39 = vpop.eup %1543 }
 0x2db   :  { %v453_v40 = vsel %vm223_vm12, %v1883_v39, 0.0 }
 0x2dc   :  { %454 = vadd.xlane.f32.xlu1 %v453_v40 }
 0x2de   :  { %v1887_v41 = vpop.eup %1545 }
 0x2df   :  { %v447_v42 = vsel %vm223_vm12, %v1887_v41, 0.0 }
 0x2e0   :  { %448 = vadd.xlane.f32.xlu1 %v447_v42 }
 0x2e2   :  { %v1891_v43 = vpop.eup %1547 }
 0x2e3   :  { %v450_v44 = vsel %vm223_vm12, %v1891_v43, 0.0 }
 0x2e4   :  { %451 = vadd.xlane.f32.xlu0 %v450_v44 }
 0x2e6   :  { %v1895_v45 = vpop.eup %1549 }
 0x2e7   :  { %v456_v46 = vsel %vm223_vm12, %v1895_v45, 0.0 }
 0x2e8   :  { %457 = vadd.xlane.f32.xlu0 %v456_v46 }
 0x2f1   :  { %282 = vrot.lane.b32.xlu1 %v1815_v14, %s1717_s27 }
 0x2fe   :  { %481 = vrot.lane.b32.xlu0 %v1824_v20, %s1717_s27 }
 0x357   :  { %v256_v47 = vpop.xlane.xlu1 %255 }
 0x358   :  { %1551 = vrcp.f32 %v256_v47 }
 0x35b   :  { %v250_v48 = vpop.xlane.xlu1 %249 }
 0x35c   :  { %1553 = vrcp.f32 %v250_v48 }
 0x35d   :  { %v259_v49 = vpop.xlane.xlu0 %258 }
 0x35e   :  { %1555 = vrcp.f32 %v259_v49 }
 0x361   :  { %v253_v50 = vpop.xlane.xlu1 %252 }
 0x362   :  { %1557 = vrcp.f32 %v253_v50 }
 0x365   :  { %v455_v51 = vpop.xlane.xlu1 %454  ;;  %v1552_v52 = vpop.eup %1551 }
 0x366   :  { %1559 = vrcp.f32 %v455_v51  ;;  %v266_v57 = vmul.f32 %v1552_v52, %v256_v47 }
 0x368   :  { %v270_v63 = vsub.f32 2.0, %v266_v57 }
 0x369   :  { %v1554_v53 = vpop.eup %1553  ;;  %v449_v54 = vpop.xlane.xlu1 %448 }
 0x36a   :  { %v264_v55 = vmul.f32 %v1554_v53, %v250_v48  ;;  %1561 = vrcp.f32 %v449_v54  ;;  %v274_v6 = vmul.f32 %v1552_v52, %v270_v63 }
 0x36b   :  { %v1556_v56 = vpop.eup %1555 }
 0x36c   :  { %v267_v14 = vmul.f32 %v1556_v56, %v259_v49  ;;  %v268_v59 = vsub.f32 2.0, %v264_v55  ;;  %v278_v23 = vmul.f32 %v1870_v19, %v274_v6 }
 0x36d   :  { %v452_v20 = vpop.xlane.xlu0 %451  ;;  %v283_v58 = vpop.permute.xlu1 %282 }
 0x36e   :  { %v271_v60 = vsub.f32 2.0, %v267_v14  ;;  %1563 = vrcp.f32 %v452_v20  ;;  %1518 = vmatprep.subr.msk.bf16.mxu0 %vm290_vm13, %v283_v58  ;;  %v292_v61 = vsel %vm290_vm13, %v283_v58, 0  ;;  %v272_v4 = vmul.f32 %v1554_v53, %v268_v59 }
 0x36f   :  { %v1558_v62 = vpop.eup %1557  ;;  %1440 = vmatpush3.bf16.msra.mxu0 %v292_v61 }
 0x370   :  { %v265_v1 = vmul.f32 %v1558_v62, %v253_v50  ;;  %v275_v2 = vmul.f32 %v1556_v56, %v271_v60  ;;  %v276_v17 = vmul.f32 %v1874_v26, %v272_v4 }
 0x371   :  { %v458_v3 = vpop.xlane.xlu0 %457 }
 0x372   :  { %v269_v5 = vsub.f32 2.0, %v265_v1  ;;  %1565 = vrcp.f32 %v458_v3  ;;  %v279_v13 = vmul.f32 %v1878_v31, %v275_v2 }
 0x373   :  { %v1560_v16 = vpop.eup %1559 }
 0x374   :  { %v273_v9 = vmul.f32 %v1558_v62, %v269_v5  ;;  %v281_v28 = vpack.c.bf16 %v279_v13, %v278_v23  ;;  %v465_v29 = vmul.f32 %v1560_v16, %v455_v51 }
 0x375   :  { %v482_v15 = vpop.permute.xlu0 %481 }
 0x376   :  { %1520 = vmatprep.subr.msk.bf16.mxu0 %vm290_vm13, %v482_v15  ;;  %v277_v18 = vmul.f32 %v1542_v36, %v273_v9  ;;  %v490_v31 = vsel %vm290_vm13, %v482_v15, 0  ;;  %v469_v26 = vsub.f32 2.0, %v465_v29  ;;  %v662_v29 = vld [vmem:[%s2174_s4] sm:$0xff] }
 0x377   :  { %v1562_v21 = vpop.eup %1561 }
 0x378   :  { %v463_v25 = vmul.f32 %v1562_v21, %v449_v54  ;;  %v280_v27 = vpack.c.bf16 %v277_v18, %v276_v17  ;;  %v473_v38 = vmul.f32 %v1560_v16, %v469_v26  ;;  %v611_v26 = vld [vmem:[%s2173_s3] sm:$0xff] }
 0x37a   :  { %v467_v30 = vsub.f32 2.0, %v463_v25  ;;  %1441 = vmatprep.mubr.msk.bf16.mxu0 %vm223_vm12, %v280_v27  ;;  %v477_v48 = vmul.f32 %v1883_v39, %v473_v38  ;;  %v664_v27 = vld [vmem:[%s2174_s4 + $0x10] sm:$0xff] }
 0x37b   :  { %v1564_v32 = vpop.eup %1563  ;;  %1442 = vmatmul.mubr.msk.bf16.vlgmr.msra.gmra.mxu0 %vm223_vm12, %v281_v28  ;;  %v665_v28 = vld [vmem:[%s2174_s4 + $0x18] sm:$0xff] }
 0x37c   :  { %v464_v33 = vmul.f32 %v1564_v32, %v452_v20  ;;  %1452 = vmatpush3.bf16.msra.mxu0 %v490_v31  ;;  %v471_v34 = vmul.f32 %v1562_v21, %v467_v30  ;;  %v667_v30 = vpack.c.bf16 %v665_v28, %v664_v27  ;;  %v613_v31 = vld [vmem:[%s2173_s3 + $0x10] sm:$0xff] }
 0x37d   :  { %1465 = vmatprep.subr.bf16.mxu0 %v1714_v0 }
 0x37e   :  { %v468_v35 = vsub.f32 2.0, %v464_v33  ;;  %v475_v40 = vmul.f32 %v1887_v41, %v471_v34  ;;  %v614_v33 = vld [vmem:[%s2173_s3 + $0x18] sm:$0xff] }
 0x37f   :  { %v1566_v19 = vpop.eup %1565 }
 0x380   :  { %v472_v36 = vmul.f32 %v1564_v32, %v468_v35  ;;  %v466_v37 = vmul.f32 %v1566_v19, %v458_v3  ;;  %v663_v32 = vld [vmem:[%s2174_s4 + $0x8] sm:$0xff]  ;;  %v74_v35 = vld [vmem:[#allocation5] sm:$0xff] }
 0x381   :  { %v666_v34 = vpack.c.bf16 %v663_v32, %v662_v29 }
 0x382   :  { %v476_v42 = vmul.f32 %v1891_v43, %v472_v36  ;;  %v470_v44 = vsub.f32 2.0, %v466_v37  ;;  %v616_v36 = vpack.c.bf16 %v614_v33, %v613_v31  ;;  %v612_v37 = vld [vmem:[%s2173_s3 + $0x8] sm:$0xff] }
 0x383   :  { %v615_v38 = vpack.c.bf16 %v612_v37, %v611_v26 }
 0x384   :  { %v474_v46 = vmul.f32 %v1566_v19, %v470_v44  ;;  %v479_v47 = vpack.c.bf16 %v476_v42, %v475_v40  ;;  %v75_v19 = vld [vmem:[#allocation5 + $0x8] sm:$0xff]  ;;  %1458 = vmatpush3.bf16.msra.mxu1 %v616_v36 }
 0x385   :  { %v661_v40 = vpack.c.bf16 %v75_v19, %v74_v35  ;;  %1459 = vmatprep.subr.bf16.mxu1 %v1714_v0 }
 0x386   :  { %v478_v49 = vmul.f32 %v1895_v45, %v474_v46  ;;  %1453 = vmatprep.mubr.msk.bf16.mxu0 %vm223_vm12, %v479_v47 }
 0x388   :  { %v480_v50 = vpack.c.bf16 %v478_v49, %v477_v48  ;;  %1460 = vmatpush3.bf16.msra.mxu1 %v615_v38 }
 0x38a   :  { %1454 = vmatmul.mubr.msk.bf16.vlgmr.msra.gmra.mxu0 %vm223_vm12, %v480_v50 }
 0x38b   :  { %1469 = vmatprep.mubr.msk.bf16.mxu0 %vm1715_vm0, %v1714_v0  ;;  %1466 = vmatpush3.bf16.msra.mxu0 %v667_v30 }
 0x38c   :  { %1467 = vmatprep.subr.bf16.mxu0 %v1714_v0 }
 0x38f   :  { %1468 = vmatpush3.bf16.msra.mxu0 %v666_v34 }
 0x392   :  { %1470 = vmatmul.mubr.msk.bf16.vlgmr.msra.gmra.mxu0 %vm98_vm1, %v661_v40 }
 0x43b   :  { %v1443_v51 = vpop.f32.mrf.mxu0 }
 0x43c   :  { %v347_v45 = vsel %vm1832_vm10, %v1443_v51, 0.0 }
 0x43d   :  { %v328_v52 = vpop.f32.mrf.mxu0 }
 0x43e   :  { %v343_v43 = vsel %vm80_vm4, %v328_v52, 0.0 }
 0x43f   :  { %v1444_v41 = vpop.f32.mrf.mxu0 }
 0x440   :  { %v349_v56 = vsel %vm1836_vm11, %v1444_v41, 0.0 }
 0x441   :  { %v331_v53 = vpop.f32.mrf.mxu0 }
 0x442   :  { %v345_v39 = vsel %vm1811_vm5, %v331_v53, 0.0 }
 0x443   :  { %v346_v54 = vadd.f32 %v345_v39, %v343_v43 }
 0x445   :  { %v348_v55 = vadd.f32 %v347_v45, %v346_v54 }
 0x447   :  { %v350_v57 = vadd.f32 %v349_v56, %v348_v55 }
 0x449   :  { %v549_v14 = vadd.f32 %v350_v57, %v1797_v7 }
 0x44a   :  { %v1455_v20 = vpop.f32.mrf.mxu0 }
 0x44b   :  { %v551_v58 = vsel %vm98_vm1, %v549_v14, 0.0  ;;  %v545_v2 = vsel %vm1832_vm10, %v1455_v20, 0.0  ;;  %v1977_v20 = vshrl.u32 %v77_v10, 7 }
 0x44c   :  { %v526_v59 = vpop.f32.mrf.mxu0  ;;  %552 = vadd.xlane.f32.xlu1 %v551_v58 }
 0x44d   :  { %v541_v62 = vsel %vm80_vm4, %v526_v59, 0.0  ;;  %v600_v59 = vsub.s32 0, %v1977_v20 }
 0x44e   :  { %v1456_v60 = vpop.f32.mrf.mxu0 }
 0x44f   :  { %v547_v7 = vsel %vm1836_vm11, %v1456_v60, 0.0 }
 0x450   :  { %v529_v61 = vpop.f32.mrf.mxu0 }
 0x451   :  { %v543_v63 = vsel %vm1811_vm5, %v529_v61, 0.0  ;;  %v1983_v61 = vld [vmem:[%s2177_s7] sm:$0xff] }
 0x452   :  { %v544_v1 = vadd.f32 %v543_v63, %v541_v62 }
 0x454   :  { %v546_v3 = vadd.f32 %v545_v2, %v544_v1  ;;  %v601_v2 = vrot.slane %v1983_v61, %v600_v59 }
 0x456   :  { %v548_v4 = vadd.f32 %v547_v7, %v546_v3  ;;  %v606_v3 = vsub.s32 1, %v1977_v20 }
 0x458   :  { %v550_v5 = vadd.f32 %v548_v4, %v1799_v8 }
 0x45a   :  { %v554_v6 = vsel %vm98_vm1, %v550_v5, 0.0 }
 0x45b   :  { %555 = vadd.xlane.f32.xlu0 %v554_v6 }
 0x4d5   :  { %v553_v9 = vpop.xlane.xlu1 %552 }
 0x4d6   :  { %v558_v13 = vmul.f32 0.03125, %v553_v9 }
 0x4d8   :  { %v1939_v15 = vsub.f32 %v549_v14, %v558_v13 }
 0x4da   :  { %v562_v16 = vmul.f32 %v1939_v15, %v1939_v15 }
 0x4dc   :  { %v564_v17 = vsel %vm98_vm1, %v562_v16, 0.0 }
 0x4dd   :  { %565 = vadd.xlane.f32.xlu1 %v564_v17 }
 0x4e4   :  { %v556_v18 = vpop.xlane.xlu0 %555 }
 0x4e5   :  { %v559_v21 = vmul.f32 0.03125, %v556_v18 }
 0x4e7   :  { %v1944_v23 = vsub.f32 %v550_v5, %v559_v21  ;;  %v607_v5 = vrot.slane %v1983_v61, %v606_v3 }
 0x4e9   :  { %v563_v8 = vmul.f32 %v1944_v23, %v1944_v23 }
 0x4eb   :  { %v567_v25 = vsel %vm98_vm1, %v563_v8, 0.0 }
 0x4ec   :  { %568 = vadd.xlane.f32.xlu0 %v567_v25 }
 0x566   :  { %v566_v42 = vpop.xlane.xlu1 %565 }
 0x567   :  { %v570_v44 = vmul.f32 0.032258064, %v566_v42 }
 0x569   :  { %1567 = vrsqrt.f32 %v570_v44  ;;  %vm574_vm14 = vcmp.eq.f32.partialorder %v570_v44, inf  ;;  %v577_v50 = vand.u32 2147483648, %v570_v44  ;;  %vm576_vm15 = vcmp.eq.f32.partialorder %v570_v44, 0.0 }
 0x575   :  { %v569_v46 = vpop.xlane.xlu0 %568 }
 0x576   :  { %v1568_v47 = vpop.eup %1567  ;;  %v571_v48 = vmul.f32 0.032258064, %v569_v46 }
 0x577   :  { %v573_v49 = vmul.f32 %v1568_v47, %v570_v44 }
 0x578   :  { %1569 = vrsqrt.f32 %v571_v48  ;;  %vm581_vm2 = vcmp.eq.f32.partialorder %v571_v48, inf  ;;  %v584_v39 = vand.u32 2147483648, %v571_v48  ;;  %vm583_vm3 = vcmp.eq.f32.partialorder %v571_v48, 0.0 }
 0x579   :  { %v575_v51 = vsel %vm574_vm14, %v570_v44, %v573_v49 }
 0x57a   :  { %v578_v52 = vsel %vm576_vm15, %v577_v50, %v575_v51 }
 0x57b   :  { %v586_v41 = vadd.f32 0.001, %v578_v52 }
 0x57d   :  { %1571 = vrcp.f32 %v586_v41 }
 0x585   :  { %v1570_v53 = vpop.eup %1569 }
 0x586   :  { %v580_v43 = vmul.f32 %v1570_v53, %v571_v48 }
 0x588   :  { %v582_v54 = vsel %vm581_vm2, %v571_v48, %v580_v43 }
 0x589   :  { %v585_v45 = vsel %vm583_vm3, %v584_v39, %v582_v54 }
 0x58a   :  { %v587_v55 = vadd.f32 0.001, %v585_v45  ;;  %v1572_v56 = vpop.eup %1571 }
 0x58b   :  { %v590_v57 = vmul.f32 %v1572_v56, %v586_v41 }
 0x58c   :  { %1573 = vrcp.f32 %v587_v55 }
 0x58d   :  { %v592_v14 = vsub.f32 2.0, %v590_v57 }
 0x58f   :  { %v594_v58 = vmul.f32 %v1572_v56, %v592_v14 }
 0x591   :  { %v596_v1 = vmul.f32 %v594_v58, %v1939_v15  ;;  %v705_v15 = vpop.f32.mrf.mxu0 }
 0x592   :  { %v1997_v17 = vpack.c.bf16 %v705_v15, %v705_v15 }
 0x593   :  { %v602_v4 = vmul.f32 %v601_v2, %v596_v1  ;;  %v1471_v18 = vpop.f32.mrf.mxu0 }
 0x594   :  { %1521 = vmatprep.subr.msk.bf16.mxu1 %vm98_vm1, %v1997_v17  ;;  %v726_v21 = vsel %vm98_vm1, %v1997_v17, 0 }
 0x595   :  { %v1990_v9 = vadd.f32 %v607_v5, %v602_v4 }
 0x599   :  { %v1574_v60 = vpop.eup %1573 }
 0x59a   :  { %v591_v62 = vmul.f32 %v1574_v60, %v587_v55 }
 0x59c   :  { %v593_v63 = vsub.f32 2.0, %v591_v62 }
 0x59e   :  { %v595_v7 = vmul.f32 %v1574_v60, %v593_v63 }
 0x5a0   :  { %v597_v10 = vmul.f32 %v595_v7, %v1944_v23  ;;  %v708_v23 = vpop.f32.mrf.mxu0 }
 0x5a1   :  { %v2003_v8 = vpack.c.bf16 %v708_v23, %v708_v23 }
 0x5a2   :  { %v603_v6 = vmul.f32 %v601_v2, %v597_v10  ;;  %v1472_v25 = vpop.f32.mrf.mxu0 }
 0x5a3   :  { %v922_v36 = vsel %vm98_vm1, %v2003_v8, 0 }
 0x5a4   :  { %v1992_v13 = vadd.f32 %v607_v5, %v603_v6 }
 0x5a6   :  { %v610_v16 = vpack.c.bf16 %v1992_v13, %v1990_v9 }
 0x5a8   :  { %1462 = vmatmul.mubr.msk.bf16.vlgmr.msra.gmra.mxu1 %vm98_vm1, %v610_v16 }
 0x5a9   :  { %1474 = vmatpush3.bf16.xpose.msra.mxu1 %v726_v21 }
 0x5aa   :  { %1523 = vmatprep.subr.msk.bf16.mxu1 %vm98_vm1, %v2003_v8 }
 0x668   :  { %v654_v27 = vpop.f32.mrf.mxu1 }
 0x669   :  { %v713_v28 = vsel %vm80_vm4, %v654_v27, 0.0  ;;  %v714_v29 = vsel %vm1811_vm5, %v654_v27, 0.0  ;;  %v715_v30 = vsel %vm1832_vm10, %v654_v27, 0.0  ;;  %v716_v32 = vsel %vm1836_vm11, %v654_v27, 0.0 }
 0x66a   :  { %v717_v31 = vpack.c.bf16 %v714_v29, %v713_v28  ;;  %v718_v33 = vpack.c.bf16 %v716_v32, %v715_v30  ;;  %v1463_v26 = vpop.f32.mrf.mxu1 }
 0x66c   :  { %v657_v34 = vpop.f32.mrf.mxu1  ;;  %1475 = vmatprep.mubr.msk.bf16.mxu1 %vm98_vm1, %v717_v31 }
 0x66d   :  { %v909_v35 = vsel %vm80_vm4, %v657_v34, 0.0  ;;  %v910_v19 = vsel %vm1811_vm5, %v657_v34, 0.0  ;;  %1476 = vmatmul.mubr.msk.bf16.vlgmr.msra.gmra.mxu1 %vm98_vm1, %v718_v33  ;;  %v911_v40 = vsel %vm1832_vm10, %v657_v34, 0.0  ;;  %v912_v42 = vsel %vm1836_vm11, %v657_v34, 0.0 }
 0x66e   :  { %v913_v37 = vpack.c.bf16 %v910_v19, %v909_v35  ;;  %1486 = vmatpush3.bf16.xpose.msra.mxu1 %v922_v36  ;;  %v1464_v38 = vpop.f32.mrf.mxu1  ;;  %v914_v44 = vpack.c.bf16 %v912_v42, %v911_v40 }
 0x66f   :  { %1497 = vmatprep.subr.bf16.mxu1 %v1714_v0 }
 0x670   :  { %1487 = vmatprep.mubr.msk.bf16.mxu1 %vm98_vm1, %v913_v37 }
 0x675   :  { %1488 = vmatmul.mubr.msk.bf16.vlgmr.msra.gmra.mxu1 %vm98_vm1, %v914_v44 }
 0x676   :  { %1501 = vmatprep.mubr.msk.bf16.mxu1 %vm1715_vm0, %v1714_v0 }
 0x72d   :  { %v1477_v46 = vpop.f32.mrf.mxu1 }
 0x72e   :  { %v779_v50 = vmul.f32 0.17677669, %v1477_v46 }
 0x72f   :  { %v762_v47 = vpop.f32.mrf.mxu1 }
 0x730   :  { %v777_v48 = vmul.f32 0.17677669, %v762_v47  ;;  %v787_v39 = vsel %vm223_vm12, %v779_v50, -inf }
 0x731   :  { %v1478_v49 = vpop.f32.mrf.mxu1 }
 0x732   :  { %v781_v51 = vsel %vm223_vm12, %v777_v48, -inf  ;;  %v780_v43 = vmul.f32 0.17677669, %v1478_v49 }
 0x733   :  { %782 = vmax.xlane.f32.xlu1 %v781_v51  ;;  %v765_v52 = vpop.f32.mrf.mxu1 }
 0x734   :  { %v778_v41 = vmul.f32 0.17677669, %v765_v52  ;;  %v790_v58 = vsel %vm223_vm12, %v780_v43, -inf }
 0x735   :  { %v1489_v53 = vpop.f32.mrf.mxu1 }
 0x736   :  { %v784_v54 = vsel %vm223_vm12, %v778_v41, -inf  ;;  %v975_v57 = vmul.f32 0.17677669, %v1489_v53 }
 0x737   :  { %788 = vmax.xlane.f32.xlu1 %v787_v39  ;;  %v958_v45 = vpop.f32.mrf.mxu1  ;;  %785 = vmax.xlane.f32.xlu0 %v784_v54 }
 0x738   :  { %v973_v55 = vmul.f32 0.17677669, %v958_v45  ;;  %v983_v63 = vsel %vm223_vm12, %v975_v57, -inf }
 0x739   :  { %v1490_v56 = vpop.f32.mrf.mxu1 }
 0x73a   :  { %v977_v14 = vsel %vm223_vm12, %v973_v55, -inf  ;;  %v976_v62 = vmul.f32 0.17677669, %v1490_v56 }
 0x73b   :  { %978 = vmax.xlane.f32.xlu1 %v977_v14  ;;  %v961_v59 = vpop.f32.mrf.mxu1  ;;  %791 = vmax.xlane.f32.xlu0 %v790_v58 }
 0x73c   :  { %v974_v60 = vmul.f32 0.17677669, %v961_v59  ;;  %v986_v2 = vsel %vm223_vm12, %v976_v62, -inf }
 0x73e   :  { %v980_v1 = vsel %vm223_vm12, %v974_v60, -inf }
 0x73f   :  { %984 = vmax.xlane.f32.xlu1 %v983_v63  ;;  %981 = vmax.xlane.f32.xlu0 %v980_v1 }
 0x743   :  { %987 = vmax.xlane.f32.xlu0 %v986_v2 }
 0x7bc   :  { %v783_v3 = vpop.xlane.xlu1 %782 }
 0x7bd   :  { %v793_v7 = vsub.f32 %v777_v48, %v783_v3 }
 0x7bf   :  { %v797_v16 = vmul.f32 1.442695, %v793_v7 }
 0x7c0   :  { %v789_v10 = vpop.xlane.xlu1 %788  ;;  %v786_v4 = vpop.xlane.xlu0 %785 }
 0x7c1   :  { %v795_v5 = vsub.f32 %v779_v50, %v789_v10  ;;  %v794_v6 = vsub.f32 %v778_v41, %v786_v4 }
 0x7c3   :  { %v801_v15 = vmul.f32 1.442695, %v795_v5  ;;  %v799_v18 = vmul.f32 1.442695, %v794_v6 }
 0x7c4   :  { %v979_v21 = vpop.xlane.xlu1 %978  ;;  %v792_v23 = vpop.xlane.xlu0 %791 }
 0x7c5   :  { %1575 = vpow2.f32 %v801_v15  ;;  %v796_v25 = vsub.f32 %v780_v43, %v792_v23  ;;  %v989_v27 = vsub.f32 %v973_v55, %v979_v21 }
 0x7c6   :  { %1577 = vpow2.f32 %v799_v18 }
 0x7c7   :  { %1579 = vpow2.f32 %v797_v16  ;;  %v803_v28 = vmul.f32 1.442695, %v796_v25  ;;  %v993_v33 = vmul.f32 1.442695, %v989_v27 }
 0x7c8   :  { %v985_v29 = vpop.xlane.xlu1 %984  ;;  %v982_v30 = vpop.xlane.xlu0 %981 }
 0x7c9   :  { %v991_v32 = vsub.f32 %v975_v57, %v985_v29  ;;  %v990_v31 = vsub.f32 %v974_v60, %v982_v30  ;;  %1581 = vpow2.f32 %v803_v28 }
 0x7cb   :  { %v997_v26 = vmul.f32 1.442695, %v991_v32  ;;  %v995_v34 = vmul.f32 1.442695, %v990_v31 }
 0x7cc   :  { %v988_v35 = vpop.xlane.xlu0 %987 }
 0x7cd   :  { %1583 = vpow2.f32 %v997_v26  ;;  %v992_v19 = vsub.f32 %v976_v62, %v988_v35 }
 0x7ce   :  { %1585 = vpow2.f32 %v995_v34 }
 0x7cf   :  { %1587 = vpow2.f32 %v993_v33  ;;  %v999_v36 = vmul.f32 1.442695, %v992_v19 }
 0x7d1   :  { %1589 = vpow2.f32 %v999_v36 }
 0x7d2   :  { %v2040_v37 = vpop.eup %1575 }
 0x7d3   :  { %v2042_v38 = vpop.eup %1577  ;;  %v811_v40 = vsel %vm223_vm12, %v2040_v37, 0.0 }
 0x7d4   :  { %v2046_v42 = vpop.eup %1579  ;;  %812 = vadd.xlane.f32.xlu1 %v811_v40  ;;  %v808_v44 = vsel %vm223_vm12, %v2042_v38, 0.0 }
 0x7d5   :  { %809 = vadd.xlane.f32.xlu0 %v808_v44  ;;  %v805_v47 = vsel %vm223_vm12, %v2046_v42, 0.0 }
 0x7d6   :  { %v2050_v46 = vpop.eup %1581 }
 0x7d7   :  { %v814_v48 = vsel %vm223_vm12, %v2050_v46, 0.0 }
 0x7d8   :  { %806 = vadd.xlane.f32.xlu1 %v805_v47 }
 0x7d9   :  { %815 = vadd.xlane.f32.xlu0 %v814_v48 }
 0x7da   :  { %v2056_v49 = vpop.eup %1583 }
 0x7db   :  { %v2058_v50 = vpop.eup %1585  ;;  %v1007_v51 = vsel %vm223_vm12, %v2056_v49, 0.0 }
 0x7dc   :  { %v2062_v52 = vpop.eup %1587  ;;  %1008 = vadd.xlane.f32.xlu1 %v1007_v51  ;;  %v1004_v41 = vsel %vm223_vm12, %v2058_v50, 0.0 }
 0x7dd   :  { %1005 = vadd.xlane.f32.xlu0 %v1004_v41  ;;  %v1001_v43 = vsel %vm223_vm12, %v2062_v52, 0.0 }
 0x7de   :  { %v2066_v53 = vpop.eup %1589 }
 0x7df   :  { %v1010_v39 = vsel %vm223_vm12, %v2066_v53, 0.0 }
 0x7e0   :  { %1002 = vadd.xlane.f32.xlu1 %v1001_v43 }
 0x7e1   :  { %1011 = vadd.xlane.f32.xlu0 %v1010_v39 }
 0x7f1   :  { %840 = vrot.lane.b32.xlu1 %v1997_v17, %s1716_s2 }
 0x7f7   :  { %1036 = vrot.lane.b32.xlu0 %v2003_v8, %s1716_s2 }
 0x85d   :  { %v813_v54 = vpop.xlane.xlu1 %812 }
 0x85e   :  { %1591 = vrcp.f32 %v813_v54  ;;  %v810_v45 = vpop.xlane.xlu0 %809 }
 0x85f   :  { %1593 = vrcp.f32 %v810_v45 }
 0x861   :  { %v807_v55 = vpop.xlane.xlu1 %806 }
 0x862   :  { %1595 = vrcp.f32 %v807_v55  ;;  %v816_v56 = vpop.xlane.xlu0 %815 }
 0x863   :  { %1597 = vrcp.f32 %v816_v56 }
 0x865   :  { %v1009_v57 = vpop.xlane.xlu1 %1008 }
 0x866   :  { %1599 = vrcp.f32 %v1009_v57  ;;  %v1006_v14 = vpop.xlane.xlu0 %1005 }
 0x867   :  { %1601 = vrcp.f32 %v1006_v14 }
 0x869   :  { %v1003_v58 = vpop.xlane.xlu1 %1002 }
 0x86a   :  { %1603 = vrcp.f32 %v1003_v58  ;;  %v1012_v59 = vpop.xlane.xlu0 %1011 }
 0x86b   :  { %v1592_v60 = vpop.eup %1591  ;;  %1605 = vrcp.f32 %v1012_v59 }
 0x86c   :  { %v1594_v17 = vpop.eup %1593  ;;  %v823_v62 = vmul.f32 %v1592_v60, %v813_v54 }
 0x86d   :  { %v822_v8 = vmul.f32 %v1594_v17, %v810_v45  ;;  %v841_v63 = vpop.permute.xlu1 %840 }
 0x86e   :  { %v849_v1 = vsel %vm290_vm13, %v841_v63, 0  ;;  %1522 = vmatprep.subr.msk.bf16.mxu0 %vm290_vm13, %v841_v63  ;;  %v827_v3 = vsub.f32 2.0, %v823_v62  ;;  %v1037_v10 = vpop.permute.xlu0 %1036 }
 0x86f   :  { %v1596_v2 = vpop.eup %1595  ;;  %v826_v7 = vsub.f32 2.0, %v822_v8  ;;  %1480 = vmatpush3.bf16.msra.mxu0 %v849_v1 }
 0x870   :  { %v1598_v4 = vpop.eup %1597  ;;  %v821_v5 = vmul.f32 %v1596_v2, %v807_v55  ;;  %1524 = vmatprep.subr.msk.bf16.mxu0 %vm290_vm13, %v1037_v10  ;;  %v831_v21 = vmul.f32 %v1592_v60, %v827_v3 }
 0x871   :  { %v824_v6 = vmul.f32 %v1598_v4, %v816_v56  ;;  %v830_v16 = vmul.f32 %v1594_v17, %v826_v7 }
 0x872   :  { %v825_v15 = vsub.f32 2.0, %v821_v5  ;;  %v835_v26 = vmul.f32 %v2040_v37, %v831_v21 }
 0x873   :  { %v1600_v18 = vpop.eup %1599  ;;  %v828_v23 = vsub.f32 2.0, %v824_v6  ;;  %v834_v32 = vmul.f32 %v2042_v38, %v830_v16 }
 0x874   :  { %v1602_v25 = vpop.eup %1601  ;;  %v829_v27 = vmul.f32 %v1596_v2, %v825_v15  ;;  %v1019_v28 = vmul.f32 %v1600_v18, %v1009_v57 }
 0x875   :  { %v832_v29 = vmul.f32 %v1598_v4, %v828_v23  ;;  %v1018_v30 = vmul.f32 %v1602_v25, %v1006_v14 }
 0x876   :  { %v833_v31 = vmul.f32 %v2046_v42, %v829_v27  ;;  %v1023_v35 = vsub.f32 2.0, %v1019_v28  ;;  %v1045_v42 = vsel %vm290_vm13, %v1037_v10, 0 }
 0x877   :  { %v1604_v33 = vpop.eup %1603  ;;  %v836_v34 = vmul.f32 %v2050_v46, %v832_v29  ;;  %v1022_v19 = vsub.f32 2.0, %v1018_v30 }
 0x878   :  { %v1606_v36 = vpop.eup %1605  ;;  %v1017_v40 = vmul.f32 %v1604_v33, %v1003_v58  ;;  %v837_v44 = vpack.c.bf16 %v834_v32, %v833_v31  ;;  %v1027_v43 = vmul.f32 %v1600_v18, %v1023_v35  ;;  %v1167_v31 = vld [vmem:[#allocation7 + $0x10] sm:$0xff] }
 0x879   :  { %v838_v47 = vpack.c.bf16 %v836_v34, %v835_v26  ;;  %v1020_v48 = vmul.f32 %v1606_v36, %v1012_v59  ;;  %v1026_v51 = vmul.f32 %v1602_v25, %v1022_v19  ;;  %v1166_v34 = vld [vmem:[#allocation7 + $0x8] sm:$0xff]  ;;  %v1228_v19 = vld [vmem:[%s2176_s6 + $0x30] sm:$0xff] }
 0x87a   :  { %v1021_v41 = vsub.f32 2.0, %v1017_v40  ;;  %1481 = vmatprep.mubr.msk.bf16.mxu0 %vm223_vm12, %v837_v44  ;;  %v1031_v45 = vmul.f32 %v2056_v49, %v1027_v43 }
 0x87b   :  { %v1024_v38 = vsub.f32 2.0, %v1020_v48  ;;  %1482 = vmatmul.mubr.msk.bf16.vlgmr.msra.gmra.mxu0 %vm223_vm12, %v838_v47  ;;  %v1030_v39 = vmul.f32 %v2058_v50, %v1026_v51 }
 0x87c   :  { %v1025_v37 = vmul.f32 %v1604_v33, %v1021_v41  ;;  %1492 = vmatpush3.bf16.msra.mxu0 %v1045_v42  ;;  %v1168_v33 = vld [vmem:[#allocation7 + $0x18] sm:$0xff] }
 0x87d   :  { %v1028_v46 = vmul.f32 %v1606_v36, %v1024_v38  ;;  %1505 = vmatprep.subr.bf16.mxu0 %v1714_v0  ;;  %v1170_v26 = vpack.c.bf16 %v1168_v33, %v1167_v31  ;;  %v1229_v36 = vld [vmem:[%s2176_s6 + $0x38] sm:$0xff] }
 0x87e   :  { %v1029_v54 = vmul.f32 %v2062_v52, %v1025_v37  ;;  %v1233_v40 = vpack.c.bf16 %v1229_v36, %v1228_v19 }
 0x87f   :  { %v1032_v55 = vmul.f32 %v2066_v53, %v1028_v46  ;;  %1498 = vmatpush3.bf16.msra.mxu1 %v1170_v26 }
 0x880   :  { %v1033_v56 = vpack.c.bf16 %v1030_v39, %v1029_v54  ;;  %1499 = vmatprep.subr.bf16.mxu1 %v1714_v0 }
 0x881   :  { %v1034_v57 = vpack.c.bf16 %v1032_v55, %v1031_v45 }
 0x882   :  { %1493 = vmatprep.mubr.msk.bf16.mxu0 %vm223_vm12, %v1033_v56 }
 0x883   :  { %1494 = vmatmul.mubr.msk.bf16.vlgmr.msra.gmra.mxu0 %vm223_vm12, %v1034_v57 }
 0x884   :  { %1513 = vmatprep.mubr.msk.bf16.mxu0 %vm1715_vm0, %v1714_v0  ;;  %1506 = vmatpush3.bf16.msra.mxu0 %v1233_v40 }
 0x885   :  { %1507 = vmatprep.subr.bf16.mxu0 %v1714_v0 }
 0x93b   :  { %v1483_v14 = vpop.f32.mrf.mxu0 }
 0x93c   :  { %v904_v17 = vsel %vm1832_vm10, %v1483_v14, 0.0 }
 0x93d   :  { %v885_v58 = vpop.f32.mrf.mxu0 }
 0x93e   :  { %v900_v50 = vsel %vm80_vm4, %v885_v58, 0.0 }
 0x93f   :  { %v1484_v59 = vpop.f32.mrf.mxu0 }
 0x940   :  { %v906_v63 = vsel %vm1836_vm11, %v1484_v59, 0.0 }
 0x941   :  { %v888_v60 = vpop.f32.mrf.mxu0 }
 0x942   :  { %v902_v49 = vsel %vm1811_vm5, %v888_v60, 0.0 }
 0x943   :  { %v903_v52 = vadd.f32 %v902_v49, %v900_v50  ;;  %v1495_v53 = vpop.f32.mrf.mxu0  ;;  %v1154_v50 = vsub.s32 2, %v1977_v20 }
 0x944   :  { %v1100_v16 = vsel %vm1832_vm10, %v1495_v53, 0.0 }
 0x945   :  { %v905_v62 = vadd.f32 %v904_v17, %v903_v52  ;;  %v1081_v8 = vpop.f32.mrf.mxu0 }
 0x946   :  { %v1096_v10 = vsel %vm80_vm4, %v1081_v8, 0.0  ;;  %v1160_v8 = vsub.s32 3, %v1977_v20 }
 0x947   :  { %v1496_v1 = vpop.f32.mrf.mxu0  ;;  %v907_v2 = vadd.f32 %v906_v63, %v905_v62  ;;  %v1155_v62 = vrot.slane %v1983_v61, %v1154_v50 }
 0x948   :  { %v1102_v18 = vsel %vm1836_vm11, %v1496_v1, 0.0 }
 0x949   :  { %v1084_v3 = vpop.f32.mrf.mxu0  ;;  %v1104_v7 = vadd.f32 %v907_v2, %v1990_v9 }
 0x94a   :  { %v1098_v4 = vsel %vm1811_vm5, %v1084_v3, 0.0  ;;  %v1161_v3 = vrot.slane %v1983_v61, %v1160_v8 }
 0x94b   :  { %v1099_v5 = vadd.f32 %v1098_v4, %v1096_v10  ;;  %v1106_v6 = vsel %vm98_vm1, %v1104_v7, 0.0 }
 0x94c   :  { %1107 = vadd.xlane.f32.xlu1 %v1106_v6  ;;  %v1226_v6 = vld [vmem:[%s2176_s6 + $0x20] sm:$0xff] }
 0x94d   :  { %v1101_v15 = vadd.f32 %v1100_v16, %v1099_v5  ;;  %v1227_v16 = vld [vmem:[%s2176_s6 + $0x28] sm:$0xff] }
 0x94f   :  { %v1103_v21 = vadd.f32 %v1102_v18, %v1101_v15  ;;  %v1232_v15 = vpack.c.bf16 %v1227_v16, %v1226_v6  ;;  %v1224_v18 = vld [vmem:[%s2176_s6 + $0x10] sm:$0xff]  ;;  %v1339_v6 = vsub.s32 5, %v1977_v20 }
 0x951   :  { %v1105_v9 = vadd.f32 %v1103_v21, %v1992_v13  ;;  %v1165_v13 = vld [vmem:[#allocation7] sm:$0xff]  ;;  %1508 = vmatpush3.bf16.msra.mxu0 %v1232_v15  ;;  %v1225_v21 = vld [vmem:[%s2176_s6 + $0x18] sm:$0xff] }
 0x952   :  { %v1169_v35 = vpack.c.bf16 %v1166_v34, %v1165_v13  ;;  %1509 = vmatprep.subr.bf16.mxu0 %v1714_v0  ;;  %v1236_v13 = vsub.s32 6, %v1977_v20 }
 0x953   :  { %v1109_v11 = vsel %vm98_vm1, %v1105_v9, 0.0 }
 0x954   :  { %1110 = vadd.xlane.f32.xlu0 %v1109_v11  ;;  %1500 = vmatpush3.bf16.msra.mxu1 %v1169_v35  ;;  %v1222_v11 = vld [vmem:[%s2176_s6] sm:$0xff]  ;;  %v1237_v26 = vrot.slane %v1983_v61, %v1236_v13 }
 0x9d5   :  { %v1108_v23 = vpop.xlane.xlu1 %1107 }
 0x9d6   :  { %v1112_v12 = vmul.f32 0.03125, %v1108_v23  ;;  %v1223_v23 = vld [vmem:[%s2176_s6 + $0x8] sm:$0xff]  ;;  %s1718_s6 = smov [#allocation8]  }
 0x9d7   :  { %s1350_s15 = sshll.u32 %s1718_s6, 4  ;;  %s1351_s15 = int_to_ptr.vmem [resolvable:$true] %s1350_s15 }
 0x9d8   :  { %v1114_v25 = vsub.f32 %v1104_v7, %v1112_v12  ;;  %v1230_v12 = vpack.c.bf16 %v1223_v23, %v1222_v11  ;;  %v1340_v23 = vrot.slane %v1983_v61, %v1339_v6  ;;  %s1683_s16 = scalar_lea.vmem %s1351_s15, 256  ;;  %p1688_p2 = scmp.lt.s32.totalorder %s1351_s15, %s1351_s15 }
 0x9d9   :  { %p1684_p1 = scmp.ne.s32.totalorder %s1351_s15, %s1683_s16  ;;  %p1689_p3 = scmp.lt.s32.totalorder %s1683_s16, %s1683_s16 }
 0x9da   :  { %v1116_v27 = vmul.f32 %v1114_v25, %v1114_v25 }
 0x9db   :  { %p1690_p4 = por %p1689_p3, %p1688_p2 }
 0x9dc   :  { %v1118_v28 = vsel %vm98_vm1, %v1116_v27, 0.0 }
 0x9dd   :  { %1119 = vadd.xlane.f32.xlu1 %v1118_v28  ;;  %v1111_v22 = vpop.xlane.xlu0 %1110  ;;  %p1691_p5 = pnand %p1690_p4, %p1684_p1 }
 0x9de   :  { %v1113_v29 = vmul.f32 0.03125, %v1111_v22 }
 0x9e0   :  { %v1115_v30 = vsub.f32 %v1105_v9, %v1113_v29  ;;  %v1231_v9 = vpack.c.bf16 %v1225_v21, %v1224_v18 }
 0x9e2   :  { %v1117_v32 = vmul.f32 %v1115_v30, %v1115_v30  ;;  %1510 = vmatpush3.bf16.msra.mxu0 %v1231_v9 }
 0x9e3   :  { %1511 = vmatprep.subr.bf16.mxu0 %v1714_v0 }
 0x9e4   :  { %v1121_v24 = vsel %vm98_vm1, %v1117_v32, 0.0 }
 0x9e5   :  { %1122 = vadd.xlane.f32.xlu0 %v1121_v24 }
 0x9e6   :  { %1512 = vmatpush3.bf16.msra.mxu0 %v1230_v12 }
 0xa66   :  { %v1120_v44 = vpop.xlane.xlu1 %1119 }
 0xa67   :  { %v1124_v47 = vmul.f32 0.032258064, %v1120_v44 }
 0xa69   :  { %1607 = vrsqrt.f32 %v1124_v47  ;;  %vm1128_vm0 = vcmp.eq.f32.partialorder %v1124_v47, inf  ;;  %v1131_v38 = vand.u32 2147483648, %v1124_v47  ;;  %vm1130_vm4 = vcmp.eq.f32.partialorder %v1124_v47, 0.0 }
 0xa6e   :  { %v1123_v48 = vpop.xlane.xlu0 %1122 }
 0xa6f   :  { %v1125_v51 = vmul.f32 0.032258064, %v1123_v48 }
 0xa71   :  { %1609 = vrsqrt.f32 %v1125_v51  ;;  %vm1135_vm5 = vcmp.eq.f32.partialorder %v1125_v51, inf  ;;  %v1138_v45 = vand.u32 2147483648, %v1125_v51  ;;  %vm1137_vm6 = vcmp.eq.f32.partialorder %v1125_v51, 0.0 }
 0xa76   :  { %v1608_v41 = vpop.eup %1607 }
 0xa77   :  { %v1127_v43 = vmul.f32 %v1608_v41, %v1124_v47 }
 0xa79   :  { %v1129_v42 = vsel %vm1128_vm0, %v1124_v47, %v1127_v43 }
 0xa7a   :  { %v1132_v37 = vsel %vm1130_vm4, %v1131_v38, %v1129_v42 }
 0xa7b   :  { %v1140_v46 = vadd.f32 0.001, %v1132_v37 }
 0xa7d   :  { %1611 = vrcp.f32 %v1140_v46 }
 0xa7e   :  { %v1610_v39 = vpop.eup %1609 }
 0xa7f   :  { %v1134_v54 = vmul.f32 %v1610_v39, %v1125_v51 }
 0xa81   :  { %v1136_v55 = vsel %vm1135_vm5, %v1125_v51, %v1134_v54 }
 0xa82   :  { %v1139_v56 = vsel %vm1137_vm6, %v1138_v45, %v1136_v55 }
 0xa83   :  { %v1141_v57 = vadd.f32 0.001, %v1139_v56 }
 0xa85   :  { %1613 = vrcp.f32 %v1141_v57 }
 0xa8a   :  { %v1612_v14 = vpop.eup %1611 }
 0xa8b   :  { %v1144_v58 = vmul.f32 %v1612_v14, %v1140_v46 }
 0xa8d   :  { %v1146_v59 = vsub.f32 2.0, %v1144_v58 }
 0xa8f   :  { %v1148_v60 = vmul.f32 %v1612_v14, %v1146_v59 }
 0xa91   :  { %v1150_v17 = vmul.f32 %v1148_v60, %v1114_v25  ;;  %v1173_v25 = vsub.s32 7, %v1977_v20 }
 0xa92   :  { %v1614_v49 = vpop.eup %1613 }
 0xa93   :  { %v1145_v52 = vmul.f32 %v1614_v49, %v1141_v57  ;;  %v1156_v2 = vmul.f32 %v1155_v62, %v1150_v17  ;;  %v1174_v27 = vrot.slane %v1983_v61, %v1173_v25 }
 0xa95   :  { %v1147_v53 = vsub.f32 2.0, %v1145_v52  ;;  %v1162_v10 = vadd.f32 %v1161_v3, %v1156_v2 }
 0xa97   :  { %v1149_v63 = vmul.f32 %v1614_v49, %v1147_v53 }
 0xa99   :  { %v1151_v1 = vmul.f32 %v1149_v63, %v1115_v30 }
 0xa9b   :  { %v1157_v7 = vmul.f32 %v1155_v62, %v1151_v1 }
 0xa9d   :  { %v1163_v4 = vadd.f32 %v1161_v3, %v1157_v7 }
 0xa9f   :  { %v1164_v5 = vpack.c.bf16 %v1163_v4, %v1162_v10 }
 0xaa1   :  { %1502 = vmatmul.mubr.msk.bf16.vlgmr.msra.gmra.mxu1 %vm98_vm1, %v1164_v5 }
 0xb61   :  { %v1212_v28 = vpop.f32.mrf.mxu1 }
 0xb62   :  { %v1213_v29 = vadd.f32 %v1212_v28, %v1174_v27 }
 0xb63   :  { %v1503_v22 = vpop.f32.mrf.mxu1 }
 0xb64   :  { %v1219_v24 = vmax.f32 %v1213_v29, 0.0 }
 0xb65   :  { %v1215_v30 = vpop.f32.mrf.mxu1 }
 0xb66   :  { %v1216_v32 = vadd.f32 %v1215_v30, %v1174_v27 }
 0xb67   :  { %v1504_v0 = vpop.f32.mrf.mxu1 }
 0xb68   :  { %v1220_v31 = vmax.f32 %v1216_v32, 0.0 }
 0xb6a   :  { %v1221_v33 = vpack.c.bf16 %v1220_v31, %v1219_v24 }
 0xb6c   :  { %1514 = vmatmul.mubr.msk.bf16.vlgmr.msra.gmra.mxu0 %vm1238_vm7, %v1221_v33 }
 0xc2c   :  { %v1276_v34 = vpop.f32.mrf.mxu0 }
 0xc2d   :  { %v1277_v35 = vadd.f32 %v1276_v34, %v1237_v26 }
 0xc2e   :  { %v1515_v19 = vpop.f32.mrf.mxu0 }
 0xc2f   :  { %v1283_v36 = vadd.f32 %v1277_v35, %v1162_v10 }
 0xc30   :  { %v1279_v40 = vpop.f32.mrf.mxu0 }
 0xc31   :  { %v1280_v44 = vadd.f32 %v1279_v40, %v1237_v26  ;;  %v1285_v47 = vsel %vm98_vm1, %v1283_v36, 0.0 }
 0xc32   :  { %1286 = vadd.xlane.f32.xlu1 %v1285_v47  ;;  %v1516_v48 = vpop.f32.mrf.mxu0 }
 0xc33   :  { %v1284_v51 = vadd.f32 %v1280_v44, %v1163_v4  ;;  %v1333_v4 = vsub.s32 4, %v1977_v20 }
 0xc35   :  { %v1288_v41 = vsel %vm98_vm1, %v1284_v51, 0.0  ;;  %v1334_v21 = vrot.slane %v1983_v61, %v1333_v4 }
 0xc36   :  { %1289 = vadd.xlane.f32.xlu0 %v1288_v41 }
 0xcbb   :  { %v1287_v43 = vpop.xlane.xlu1 %1286 }
 0xcbc   :  { %v1291_v38 = vmul.f32 0.03125, %v1287_v43 }
 0xcbe   :  { %v1293_v42 = vsub.f32 %v1283_v36, %v1291_v38 }
 0xcbf   :  { %v1290_v37 = vpop.xlane.xlu0 %1289 }
 0xcc0   :  { %v1292_v46 = vmul.f32 0.03125, %v1290_v37  ;;  %v1295_v39 = vmul.f32 %v1293_v42, %v1293_v42 }
 0xcc2   :  { %v1294_v54 = vsub.f32 %v1284_v51, %v1292_v46  ;;  %v1297_v45 = vsel %vm98_vm1, %v1295_v39, 0.0 }
 0xcc3   :  { %1298 = vadd.xlane.f32.xlu1 %v1297_v45 }
 0xcc4   :  { %v1296_v55 = vmul.f32 %v1294_v54, %v1294_v54 }
 0xcc6   :  { %v1300_v56 = vsel %vm98_vm1, %v1296_v55, 0.0 }
 0xcc7   :  { %1301 = vadd.xlane.f32.xlu0 %v1300_v56 }
 0xd4c   :  { %v1299_v57 = vpop.xlane.xlu1 %1298 }
 0xd4d   :  { %v1303_v14 = vmul.f32 0.032258064, %v1299_v57 }
 0xd4f   :  { %1615 = vrsqrt.f32 %v1303_v14  ;;  %vm1307_vm8 = vcmp.eq.f32.partialorder %v1303_v14, inf  ;;  %v1310_v49 = vand.u32 2147483648, %v1303_v14  ;;  %vm1309_vm9 = vcmp.eq.f32.partialorder %v1303_v14, 0.0 }
 0xd50   :  { %v1302_v58 = vpop.xlane.xlu0 %1301 }
 0xd51   :  { %v1304_v59 = vmul.f32 0.032258064, %v1302_v58 }
 0xd53   :  { %1617 = vrsqrt.f32 %v1304_v59  ;;  %vm1314_vm10 = vcmp.eq.f32.partialorder %v1304_v59, inf  ;;  %v1317_v63 = vand.u32 2147483648, %v1304_v59  ;;  %vm1316_vm11 = vcmp.eq.f32.partialorder %v1304_v59, 0.0 }
 0xd5c   :  { %v1616_v60 = vpop.eup %1615 }
 0xd5d   :  { %v1306_v50 = vmul.f32 %v1616_v60, %v1303_v14 }
 0xd5f   :  { %v1308_v52 = vsel %vm1307_vm8, %v1303_v14, %v1306_v50 }
 0xd60   :  { %v1618_v53 = vpop.eup %1617  ;;  %v1311_v17 = vsel %vm1309_vm9, %v1310_v49, %v1308_v52 }
 0xd61   :  { %v1313_v62 = vmul.f32 %v1618_v53, %v1304_v59  ;;  %v1319_v8 = vadd.f32 0.001, %v1311_v17 }
 0xd63   :  { %v1315_v1 = vsel %vm1314_vm10, %v1304_v59, %v1313_v62  ;;  %1619 = vrcp.f32 %v1319_v8 }
 0xd64   :  { %v1318_v2 = vsel %vm1316_vm11, %v1317_v63, %v1315_v1 }
 0xd65   :  { %v1320_v3 = vadd.f32 0.001, %v1318_v2 }
 0xd67   :  { %1621 = vrcp.f32 %v1320_v3 }
 0xd70   :  { %v1620_v7 = vpop.eup %1619 }
 0xd71   :  { %v1323_v10 = vmul.f32 %v1620_v7, %v1319_v8 }
 0xd73   :  { %v1325_v5 = vsub.f32 2.0, %v1323_v10 }
 0xd74   :  { %v1622_v16 = vpop.eup %1621 }
 0xd75   :  { %v1324_v15 = vmul.f32 %v1622_v16, %v1320_v3  ;;  %v1327_v18 = vmul.f32 %v1620_v7, %v1325_v5 }
 0xd77   :  { %v1326_v9 = vsub.f32 2.0, %v1324_v15  ;;  %v1329_v11 = vmul.f32 %v1327_v18, %v1293_v42 }
 0xd79   :  { %v1328_v12 = vmul.f32 %v1622_v16, %v1326_v9  ;;  %v1335_v25 = vmul.f32 %v1334_v21, %v1329_v11 }
 0xd7b   :  { %v1330_v27 = vmul.f32 %v1328_v12, %v1294_v54  ;;  %v1341_v28 = vadd.f32 %v1340_v23, %v1335_v25 }
 0xd7d   :  { %v1336_v22 = vmul.f32 %v1334_v21, %v1330_v27  ;;  %1343 = vst.msk [vmem:[#allocation8] sm:$0xff] %vm98_vm1, %v1341_v28 }
 0xd7f   :  { %v1342_v29 = vadd.f32 %v1340_v23, %v1336_v22 }
 0xd81   :  { %1344 = vst.msk [vmem:[#allocation8 + $0x8] sm:$0xff] %vm98_vm1, %v1342_v29 }
 0xd82   :  { %1694 = shalt.err (!%p1691_p5)
}
 0xd83   :  { %1356 = dma.vmem_to_hbm [thread:$0]  %s1351_s15, 256, %s2178_s8, [#allocation4], %s1711_s10, %s1711_s10, %s1712_s11  }
 0xd84   :  { %1707 = dma.done.wait [#allocation4], 256  }
 0xd85   :  { %1708 = vsyncadd [#allocation4], 4294967040 }
 0xd86   :  { %1360 = vsyncpa [#allocation3], 1 }
 0xd87   :  { %1361 = vsyncpa [#allocation6], 1 }
 0xd88   :  { %1362 = vsyncpa [#allocation4], 1 }

</bundles_post_ra>
